<compile_context>
chip_gen: v7x
topology: tpu7x:2x2x1
jax: 0.10.0
libtpu: 0.0.40
codegen_flags: <defaults>
</compile_context>

<pallas_src>
import jax
import jax.numpy as jnp
from jax.experimental import pallas as pl
from jax.experimental.pallas import tpu as pltpu


def _round_up(x, m):
    return (x + m - 1) // m * m


def _pick_tile(total, max_tile, align):
    """Largest multiple of `align` that divides `total` and is <= max_tile.

    `total` is assumed to already be a multiple of `align`.
    """
    best = align
    t = align
    limit = min(total, max_tile)
    while t <= limit:
        if total % t == 0:
            best = t
        t += align
    return best


# ----------------------------------------------------------------------------
# Kernels
# ----------------------------------------------------------------------------
def _encoder_single_step_kernel(x_ref, w1_ref, b1_ref, wh_ref, bh_ref, out_ref):
    """Grid = (batch tiles,).  Whole vocab reduction in one MXU pass.

    x_ref  : (tb, Vp)  f32   (cast to bf16 in-kernel)
    w1_ref : (Vp, H)   bf16
    b1_ref : (1, H)    f32
    wh_ref : (H, 2T)   bf16  (Wm || Ws fused)
    bh_ref : (1, 2T)   f32   (bm || bs fused)
    out_ref: (tb, 2T)  f32   (mean || logsigm fused slab)
    """
    x = x_ref[...].astype(jnp.bfloat16)
    h = jnp.dot(x, w1_ref[...], preferred_element_type=jnp.float32)
    en = jnp.tanh(h + b1_ref[...])
    heads = jnp.dot(en.astype(jnp.bfloat16), wh_ref[...],
                    preferred_element_type=jnp.float32)
    out_ref[...] = heads + bh_ref[...]


def _make_multi_step_kernel(tk, w1_resident):
    """Grid = (batch tiles i, vocab reduction tiles k)."""

    def kernel(x_ref, w1_ref, b1_ref, wh_ref, bh_ref, out_ref, acc_ref):
        k = pl.program_id(1)

        if w1_resident:
            # W1 lives fully in VMEM (constant block); slice the current
            # vocab chunk in-kernel.
            off = pl.multiple_of(k * tk, tk)
            w1_tile = w1_ref[pl.ds(off, tk), :]
        else:
            w1_tile = w1_ref[...]

        partial = jnp.dot(x_ref[...].astype(jnp.bfloat16), w1_tile,
                          preferred_element_type=jnp.float32)

        @pl.when(k == 0)
        def _init():
            # Fold b1 into the init; direct assign (no zeros fill / RMW).
            acc_ref[...] = partial + b1_ref[...]

        @pl.when(k > 0)
        def _accum():
            acc_ref[...] += partial

        @pl.when(k == pl.num_programs(1) - 1)
        def _finalize():
            en = jnp.tanh(acc_ref[...])
            heads = jnp.dot(en.astype(jnp.bfloat16), wh_ref[...],
                            preferred_element_type=jnp.float32)
            out_ref[...] = heads + bh_ref[...]

    return kernel


# ----------------------------------------------------------------------------
# Parameter preprocessing (call once, outside the per-step forward)
# ----------------------------------------------------------------------------
def prepare_params(params):
    """One-time preprocessing: bf16 weight casts, head fusion, vocab padding."""
    V, H = params["w1"].shape
    T = params["wm"].shape[1]
    Vp = _round_up(V, 128)

    w1 = params["w1"].astype(jnp.bfloat16)
    if Vp != V:
        w1 = jnp.pad(w1, ((0, Vp - V), (0, 0)))
    wh = jnp.concatenate([params["wm"], params["ws"]], axis=1).astype(jnp.bfloat16)
    bh = jnp.concatenate([params["bm"], params["bs"]]).reshape(1, 2 * T)
    return {
        "w1": w1,                                   # (Vp, H) bf16
        "b1": params["b1"].reshape(1, H).astype(jnp.float32),
        "wh": wh,                                   # (H, 2T) bf16
        "bh": bh.astype(jnp.float32),               # (1, 2T) f32
        "n_input": V,
        "n_hidden": H,
        "n_topics": T,
    }


# ----------------------------------------------------------------------------
# Forward
# ----------------------------------------------------------------------------
_VMEM_W1_RESIDENT_BUDGET = 20 * 1024 * 1024   # keep W1 fully in VMEM below this
_DEFAULT_SCOPED_VMEM = 16 * 1024 * 1024       # conservative (v5e) default


def encoder_forward(doc_freq_vecs, mask, prepared, *, tb=None, tk=None):
    """Encoder forward ('normal' branch).

    doc_freq_vecs: (B, n_input) float
    mask:          (B,) or (B, 1) float
    prepared:      output of prepare_params()
    Returns (mask * kld (B,), mean (B, T), logsigm (B, T), None).
    """
    B, V = doc_freq_vecs.shape
    H = prepared["n_hidden"]
    T = prepared["n_topics"]
    assert V == prepared["n_input"]
    w1 = prepared["w1"]
    Vp = w1.shape[0]

    # ---- tiling -------------------------------------------------------------
    if tb is None:
        Bp = _round_up(B, 8)
        # >=2 batch tiles when possible so the "parallel" axis feeds both
        # v7x TensorCores; cap at 256 rows per tile.
        tb_max = max(8, min(256, Bp // 2)) if Bp >= 16 else Bp
        tb = _pick_tile(Bp, tb_max, 8)
    else:
        Bp = _round_up(B, tb)

    if tk is None:
        # Collapse the reduction to one step whenever the x-tile stays small;
        # otherwise stream large (>=2 MiB) vocab tiles.
        tk = Vp if Vp <= 8192 else _pick_tile(Vp, 4096, 128)
    assert Vp % tk == 0
    nk = Vp // tk

    # ---- inputs: x stays f32; pad only if shapes demand it -------------------
    x = doc_freq_vecs.astype(jnp.float32)
    if (Bp, Vp) != (B, V):
        x = jnp.pad(x, ((0, Bp - B), (0, Vp - V)))

    b1, wh, bh = prepared["b1"], prepared["wh"], prepared["bh"]

    # ---- VMEM footprint / compiler params ------------------------------------
    w1_resident = (nk == 1) or (Vp * H * 2 <= _VMEM_W1_RESIDENT_BUDGET)
    w1_block_bytes = (Vp if w1_resident else tk) * H * 2
    vmem_bytes = (2 * tb * tk * 4            # x (double-buffered, f32)
                  + 2 * w1_block_bytes       # W1
                  + 2 * H * 4                # b1
                  + 2 * H * 2 * T * 2        # Wm||Ws
                  + 2 * 2 * T * 4            # bm||bs
                  + 2 * tb * 2 * T * 4       # output slab
                  + tb * H * 4)              # accumulator scratch
    vmem_limit = None
    if vmem_bytes > _DEFAULT_SCOPED_VMEM // 2:
        vmem_limit = int(min(2 * vmem_bytes + (4 << 20), 96 << 20))

    out_shape = jax.ShapeDtypeStruct((Bp, 2 * T), jnp.float32)

    if nk == 1:
        grid_spec = pltpu.PrefetchScalarGridSpec(
            num_scalar_prefetch=0,
            grid=(Bp // tb,),
            in_specs=[
                pl.BlockSpec((tb, Vp), lambda i: (i, 0)),       # x
                pl.BlockSpec((Vp, H), lambda i: (0, 0)),        # W1 (resident)
                pl.BlockSpec((1, H), lambda i: (0, 0)),         # b1
                pl.BlockSpec((H, 2 * T), lambda i: (0, 0)),     # Wm||Ws
                pl.BlockSpec((1, 2 * T), lambda i: (0, 0)),     # bm||bs
            ],
            out_specs=pl.BlockSpec((tb, 2 * T), lambda i: (i, 0)),
        )
        kernel = _encoder_single_step_kernel
        dims = ("parallel",)
    else:
        if w1_resident:
            w1_spec = pl.BlockSpec((Vp, H), lambda i, k: (0, 0))   # fetched once
        else:
            w1_spec = pl.BlockSpec((tk, H), lambda i, k: (k, 0))
        grid_spec = pltpu.PrefetchScalarGridSpec(
            num_scalar_prefetch=0,
            grid=(Bp // tb, nk),
            in_specs=[
                pl.BlockSpec((tb, tk), lambda i, k: (i, k)),       # x
                w1_spec,                                           # W1
                pl.BlockSpec((1, H), lambda i, k: (0, 0)),         # b1
                pl.BlockSpec((H, 2 * T), lambda i, k: (0, 0)),     # Wm||Ws
                pl.BlockSpec((1, 2 * T), lambda i, k: (0, 0)),     # bm||bs
            ],
            out_specs=pl.BlockSpec((tb, 2 * T), lambda i, k: (i, 0)),
            scratch_shapes=[pltpu.VMEM((tb, H), jnp.float32)],
        )
        kernel = _make_multi_step_kernel(tk, w1_resident)
        dims = ("parallel", "arbitrary")

    slab = pl.pallas_call(
        kernel,
        out_shape=out_shape,
        grid_spec=grid_spec,
        compiler_params=pltpu.CompilerParams(
            dimension_semantics=dims,
            vmem_limit_bytes=vmem_limit,
        ),
    )(x, w1, b1, wh, bh)

    slab = slab[:B]
    mean = slab[:, :T]
    logsigm = slab[:, T:]

    # KLD + mask in the wrapper (tiny reduction; XLA fuses it for free).
    two_ls = 2.0 * logsigm
    kld = -0.5 * jnp.sum(1.0 - mean * mean + two_ls - jnp.exp(two_ls), axis=1)
    masked_kld = mask.reshape(B).astype(jnp.float32) * kld
    return masked_kld, mean, logsigm, None


# ----------------------------------------------------------------------------
# Reference & init
# ----------------------------------------------------------------------------
def encoder_reference(doc_freq_vecs, mask, params):
    """Pure-JAX f32 reference mirroring the PyTorch module."""
    x = doc_freq_vecs.astype(jnp.float32)
    en = jnp.tanh(x @ params["w1"] + params["b1"])
    mean = en @ params["wm"] + params["bm"]
    logsigm = en @ params["ws"] + params["bs"]
    kld = -0.5 * jnp.sum(1.0 - mean * mean + 2.0 * logsigm
                         - jnp.exp(2.0 * logsigm), axis=1)
    return mask.reshape(-1) * kld, mean, logsigm


def init_params(key, n_input, n_hidden, n_topics, *, logsigm_scale=0.0):
    """nn.Linear-style init (uniform +/- 1/sqrt(fan_in)).  The module zero-
    initializes the logsigm head; logsigm_scale>0 perturbs it so that the
    second head path can actually be validated."""
    k1, k2, k3, k4, k5, k6 = jax.random.split(key, 6)
    lim1 = 1.0 / jnp.sqrt(n_input)
    lim2 = 1.0 / jnp.sqrt(n_hidden)
    ls = float(logsigm_scale)
    return {
        "w1": jax.random.uniform(k1, (n_input, n_hidden), jnp.float32, -lim1, lim1),
        "b1": jax.random.uniform(k2, (n_hidden,), jnp.float32, -lim1, lim1),
        "wm": jax.random.uniform(k3, (n_hidden, n_topics), jnp.float32, -lim2, lim2),
        "bm": jax.random.uniform(k4, (n_topics,), jnp.float32, -lim2, lim2),
        "ws": ls * jax.random.uniform(k5, (n_hidden, n_topics), jnp.float32, -1.0, 1.0),
        "bs": ls * jax.random.uniform(k6, (n_topics,), jnp.float32, -1.0, 1.0),
    }


def _run_case(key, B, V, H, T, *, logsigm_scale, tb=None, tk=None):
    kx, km, kp = jax.random.split(key, 3)
    doc_freq_vecs = jax.random.uniform(kx, (B, V), jnp.float32, 0.0, 1.0)
    mask = (jax.random.uniform(km, (B,), jnp.float32) > 0.2).astype(jnp.float32)
    params = init_params(kp, V, H, T, logsigm_scale=logsigm_scale)
    prepared = prepare_params(params)

    kld_m, mean, logsigm, _ = encoder_forward(doc_freq_vecs, mask, prepared,
                                              tb=tb, tk=tk)
    jax.block_until_ready((kld_m, mean, logsigm))

    kld_ref, mean_ref, logsigm_ref = encoder_reference(doc_freq_vecs, mask, params)

    assert kld_m.shape == (B,)
    assert mean.shape == (B, T)
    assert logsigm.shape == (B, T)
    assert bool(jnp.all(jnp.isfinite(kld_m)))
    assert bool(jnp.allclose(mean, mean_ref, rtol=5e-2, atol=5e-2))
    assert bool(jnp.allclose(logsigm, logsigm_ref, rtol=5e-2, atol=5e-2))
    assert bool(jnp.allclose(kld_m, kld_ref, rtol=5e-2, atol=0.25))


if __name__ == "__main__":
    key = jax.random.PRNGKey(0)
    k1, k2 = jax.random.split(key, 2)

    # Case 1: module defaults (zero logsigm head).  Single-step vocab
    # reduction (tk == Vp), 2 batch tiles (both v7x TensorCores busy),
    # W1 resident, no padding, no wrapper-side x cast.
    _run_case(k1, B=256, V=2048, H=256, T=64, logsigm_scale=0.0)

    # Case 2: non-zero logsigm head + multi-step reduction path
    # (4 vocab tiles, resident W1 sliced in-kernel, f32 accumulator).
    _run_case(k2, B=96, V=1024, H=256, T=64, logsigm_scale=0.02, tb=32, tk=256)

    print("KERNEL_OK")
</pallas_src>

<mosaic_0001>
module attributes {stable_mosaic.version = 11 : i64} {
  func.func @_encoder_single_step_kernel(%arg0: i32, %arg1: memref<128x2048xf32, #tpu.memory_space<vmem>>, %arg2: memref<2048x256xbf16, #tpu.memory_space<vmem>>, %arg3: memref<1x256xf32, #tpu.memory_space<vmem>>, %arg4: memref<256x128xbf16, #tpu.memory_space<vmem>>, %arg5: memref<1x128xf32, #tpu.memory_space<vmem>>, %arg6: memref<128x128xf32, #tpu.memory_space<vmem>>) attributes {dimension_semantics = [#tpu.dimension_semantics<parallel>], iteration_bounds = array<i64: 2>, scalar_prefetch = 0 : i64, scratch_operands = 0 : i64, tpu.core_type = #tpu.core_type<tc>, window_params = [{transform_indices = @transform_0, window_bounds = array<i64: 128, 2048>}, {pipeline_mode = #tpu.pipeline_mode<synchronous>, transform_indices = @transform_1, window_bounds = array<i64: 2048, 256>}, {pipeline_mode = #tpu.pipeline_mode<synchronous>, transform_indices = @transform_2, window_bounds = array<i64: 1, 256>}, {pipeline_mode = #tpu.pipeline_mode<synchronous>, transform_indices = @transform_3, window_bounds = array<i64: 256, 128>}, {pipeline_mode = #tpu.pipeline_mode<synchronous>, transform_indices = @transform_4, window_bounds = array<i64: 1, 128>}, {transform_indices = @transform_5, window_bounds = array<i64: 128, 128>}]} {
    %c0 = arith.constant 0 : index
    %c0_0 = arith.constant 0 : index
    %0 = vector.load %arg1[%c0, %c0_0] : memref<128x2048xf32, #tpu.memory_space<vmem>>, vector<128x2048xf32>
    %1 = arith.truncf %0 : vector<128x2048xf32> to vector<128x2048xbf16>
    %c0_1 = arith.constant 0 : index
    %c0_2 = arith.constant 0 : index
    %2 = vector.load %arg2[%c0_1, %c0_2] : memref<2048x256xbf16, #tpu.memory_space<vmem>>, vector<2048x256xbf16>
    %cst = arith.constant dense<0.000000e+00> : vector<128x256xf32>
    %3 = tpu.matmul %1, %2, %cst {dimension_numbers = #tpu.dot_dimension_numbers<[1], [0], [0], [1], [0, 0, 1, 1], [], []>} : vector<128x2048xbf16>, vector<2048x256xbf16>, vector<128x256xf32> -> vector<128x256xf32>
    %c0_3 = arith.constant 0 : index
    %c0_4 = arith.constant 0 : index
    %4 = vector.load %arg3[%c0_3, %c0_4] : memref<1x256xf32, #tpu.memory_space<vmem>>, vector<1x256xf32>
    %5 = vector.broadcast %4 : vector<1x256xf32> to vector<128x256xf32>
    %6 = arith.addf %3, %5 : vector<128x256xf32>
    %7 = math.tanh %6 : vector<128x256xf32>
    %8 = arith.truncf %7 : vector<128x256xf32> to vector<128x256xbf16>
    %c0_5 = arith.constant 0 : index
    %c0_6 = arith.constant 0 : index
    %9 = vector.load %arg4[%c0_5, %c0_6] : memref<256x128xbf16, #tpu.memory_space<vmem>>, vector<256x128xbf16>
    %cst_7 = arith.constant dense<0.000000e+00> : vector<128x128xf32>
    %10 = tpu.matmul %8, %9, %cst_7 {dimension_numbers = #tpu.dot_dimension_numbers<[1], [0], [0], [1], [0, 0, 1, 1], [], []>} : vector<128x256xbf16>, vector<256x128xbf16>, vector<128x128xf32> -> vector<128x128xf32>
    %c0_8 = arith.constant 0 : index
    %c0_9 = arith.constant 0 : index
    %11 = vector.load %arg5[%c0_8, %c0_9] : memref<1x128xf32, #tpu.memory_space<vmem>>, vector<1x128xf32>
    %12 = vector.broadcast %11 : vector<1x128xf32> to vector<128x128xf32>
    %13 = arith.addf %10, %12 : vector<128x128xf32>
    %c0_10 = arith.constant 0 : index
    %c0_11 = arith.constant 0 : index
    %14 = vector.load %arg6[%c0_10, %c0_11] : memref<128x128xf32, #tpu.memory_space<vmem>>, vector<128x128xf32>
    tpu.vector_store %arg6[%c0_10, %c0_11], %13 {strides = array<i32>} : memref<128x128xf32, #tpu.memory_space<vmem>>, vector<128x128xf32>,
    return
  }
  func.func @transform_0(%arg0: i32) -> (i32, i32) {
    %c0_i32 = arith.constant 0 : i32
    %c0_i32_0 = arith.constant 0 : i32
    return %arg0, %c0_i32 : i32, i32
  }
  func.func @transform_1(%arg0: i32) -> (i32, i32) {
    %c0_i32 = arith.constant 0 : i32
    %c0_i32_0 = arith.constant 0 : i32
    %c0_i32_1 = arith.constant 0 : i32
    return %c0_i32, %c0_i32_0 : i32, i32
  }
  func.func @transform_2(%arg0: i32) -> (i32, i32) {
    %c0_i32 = arith.constant 0 : i32
    %c0_i32_0 = arith.constant 0 : i32
    %c0_i32_1 = arith.constant 0 : i32
    return %c0_i32, %c0_i32_0 : i32, i32
  }
  func.func @transform_3(%arg0: i32) -> (i32, i32) {
    %c0_i32 = arith.constant 0 : i32
    %c0_i32_0 = arith.constant 0 : i32
    %c0_i32_1 = arith.constant 0 : i32
    return %c0_i32, %c0_i32_0 : i32, i32
  }
  func.func @transform_4(%arg0: i32) -> (i32, i32) {
    %c0_i32 = arith.constant 0 : i32
    %c0_i32_0 = arith.constant 0 : i32
    %c0_i32_1 = arith.constant 0 : i32
    return %c0_i32, %c0_i32_0 : i32, i32
  }
  func.func @transform_5(%arg0: i32) -> (i32, i32) {
    %c0_i32 = arith.constant 0 : i32
    %c0_i32_0 = arith.constant 0 : i32
    return %arg0, %c0_i32 : i32, i32
  }
}

</mosaic_0001>

<bundles_post_ra>
// kernel: tpu_custom_call.1
= control target key start
LH: loop header
LB: loop body
LE: loop exit
PB: predicated region body
PF: predicated region fallthrough
CT: control target
= control target key end

     0   :  { %10 = vsyncpa [#allocation3], 0  ;;  %s5917_s0 = inlined_call_operand.hbm [shape: f32[256,2048], index: 0, kind: input, shape index: {}]   ;;  %s5918_s1 = inlined_call_operand.hbm [shape: bf16[2048,256], index: 1, kind: input, shape index: {}]   ;;  %s5919_s2 = inlined_call_operand.hbm [shape: f32[1,256], index: 2, kind: input, shape index: {}]   ;;  %s5920_s3 = inlined_call_operand.hbm [shape: bf16[256,128], index: 3, kind: input, shape index: {}]   ;;  %s5921_s4 = inlined_call_operand.hbm [shape: f32[1,128], index: 4, kind: input, shape index: {}]   ;;  %s5922_s5 = inlined_call_operand.hbm [shape: f32[256,128], index: 5, kind: output, shape index: {}]  }
   0x1   :  { %12 = vsyncpa [#allocation3 + $0x1], 0 }
   0x2   :  { %13 = vsyncpa [#allocation6], 0 }
   0x3   :  { %14 = vsyncpa [#allocation9], 0 }
   0x4   :  { %15 = vsyncpa [#allocation4], 0 }
   0x5   :  { %17 = vsyncpa [#allocation4 + $0x1], 0  ;;  %s5028_s18 = smov 0   ;;  %s5030_s19 = smov 0  }
   0x6   :  { %s5032_s20 = smov 0   ;;  %s5034_s21 = smov 0  }
   0x7 LB: > { %s5049_s22 = sadd.s32 4294967295, %s4983_s21   ;;  %s3558_s23 = sadd.s32 4294967294, %s4983_s21   ;;  %s4983_s21 = sphi %s5034_s21, %s5945_s21   ;;  %s4979_s20 = sphi %s5032_s20, %s5944_s20   ;;  %s4975_s19 = sphi %s5030_s19, %s5943_s19   ;;  %s4971_s18 = sphi %s5028_s18, %s5942_s18  }
   0x8   : > { %p43_p0 = scmp.ne.s32.totalorder %s4975_s19, %s4971_s18  ;;  %p5923_p1 = scmp.eq.s32.totalorder %s5049_s22, 0 }
   0x9   : > { %p157_p3 = scmp.eq.s32.totalorder %s3558_s23, 1  ;;  %p3559_p5 = scmp.ge.s32.totalorder %s4983_s21, 1 }
   0xa   : > { %p5058_p4 = por %p5923_p1, %p43_p0  ;;  %p164_p7 = scmp.lt.s32.totalorder %s4983_s21, 3 }
   0xb   : > { %p5063_p6 = por %p157_p3, %p43_p0  ;;  %s4985_s27 = smov [#allocation5]  }
   0xc   : > { %s5926_s24 = scalar_select %p5058_p4, 1, 0 }
   0xd   : > { %s5927_s25 = scalar_select %p5063_p6, 1, 0 }
   0xe   : > { %p5068_p8 = pnand %p3559_p5, %p164_p7  ;;  %s176_s28 = sshll.u32 %s4985_s27, 4  ;;  %s5072_s28 = int_to_ptr.vmem [resolvable:$true] %s176_s28 }
   0xf   : > { %s4986_s30 = smov [#allocation8]   ;;  %s4767_s9 = scalar_lea.hbm %s5918_s1, 32768 }
  0x10   : > { %s5928_s26 = scalar_select %p5068_p8, 1, 0 }
  0x11   : > { %p4229_p9 = pneg %p5068_p8  ;;  %s200_s6 = sshll.u32 %s4986_s30, 4  ;;  %s5083_s6 = int_to_ptr.vmem [resolvable:$true] %s200_s6 }
  0x12   : > { %p4768_p12 = scmp.ne.s32.totalorder %s5918_s1, %s4767_s9  ;;  %p4774_p5 = scmp.lt.u32.totalorder %s4767_s9, %s5918_s1 }
  0x13   : > { %p5079_p11 = pnand %p4229_p9, %p5923_p1 }
  0x15   : > { %p5093_p13 = pneg %p5079_p11 }
  0x17   : > { %p4770_p0 = pnand %p5093_p13, %p4768_p12 }
  0x19   : > { %p4771_p3 = pneg %p4770_p0 }
  0x1b   : > { %p4776_p7 = pnand %p4774_p5, %p4771_p3 }
  0x1d   : > { %4779 = shalt.err (!%p4776_p7)
}
  0x1e   : > { %s4780_s15 = scalar_lea.vmem %s5072_s28, 32768  ;;  %p4788_p2 = scmp.lt.s32.totalorder %s5072_s28, %s5072_s28 }
  0x1f   : > { %p4781_p9 = scmp.ne.s32.totalorder %s5072_s28, %s4780_s15  ;;  %p4789_p6 = scmp.lt.s32.totalorder %s4780_s15, %s4780_s15 }
  0x21   : > { %p4783_p10 = pnand %p4781_p9, %p5093_p13  ;;  %p4790_p12 = por %p4789_p6, %p4788_p2 }
  0x23   : > { %p4784_p1 = pneg %p4783_p10 }
  0x25   : > { %p4791_p0 = pnand %p4790_p12, %p4784_p1 }
  0x27   : > { %4794 = shalt.err (!%p4791_p0)
}
  0x28   : > { %s4987_s16 = smov 128   ;;  %s4988_s17 = smov 8  }
  0x29   : > { %4232 = dma.hbm_to_vmem [thread:$0]  (!%p5079_p11), %s5918_s1, 32768, %s5072_s28, [#allocation6], %s4987_s16, %s4987_s16, %s4988_s17  }
  0x2a   : > { %s4795_s8 = scalar_lea.hbm %s5920_s3, 2048 }
  0x2b   : > { %p4796_p1 = scmp.ne.s32.totalorder %s5920_s3, %s4795_s8  ;;  %p4802_p10 = scmp.lt.u32.totalorder %s4795_s8, %s5920_s3 }
  0x2d   : > { %p4798_p2 = pnand %p4796_p1, %p5093_p13 }
  0x2f   : > { %p4799_p6 = pneg %p4798_p2 }
  0x31   : > { %p4804_p3 = pnand %p4802_p10, %p4799_p6 }
  0x33   : > { %4807 = shalt.err (!%p4804_p3)
}
  0x34   : > { %s4808_s28 = scalar_lea.vmem %s5083_s6, 2048  ;;  %p4816_p12 = scmp.lt.s32.totalorder %s5083_s6, %s5083_s6 }
  0x35   : > { %p4809_p5 = scmp.ne.s32.totalorder %s5083_s6, %s4808_s28  ;;  %p4817_p0 = scmp.lt.s32.totalorder %s4808_s28, %s4808_s28 }
  0x37   : > { %p4811_p7 = pnand %p4809_p5, %p5093_p13  ;;  %p4818_p1 = por %p4817_p0, %p4816_p12 }
  0x39   : > { %p4812_p9 = pneg %p4811_p7 }
  0x3b   : > { %p4819_p2 = pnand %p4818_p1, %p4812_p9 }
  0x3d   : > { %4822 = shalt.err (!%p4819_p2)
}
  0x3e   : > { %s4989_s14 = smov 64   ;;  %s4990_s15 = smov 4  }
  0x3f   : > { %4238 = dma.hbm_to_vmem [thread:$0]  (!%p5079_p11), %s5920_s3, 2048, %s5083_s6, [#allocation9], %s4989_s14, %s4989_s14, %s4990_s15  }
  0x40   : > { %s4991_s27 = smov [#allocation7]   ;;  %s4992_s7 = smov [#allocation10]  }
  0x41   : > { %s190_s30 = sshll.u32 %s4991_s27, 4  ;;  %s214_s8 = sshll.u32 %s4992_s7, 4  ;;  %s191_s30 = int_to_ptr.vmem [resolvable:$true] %s190_s30  ;;  %s5139_s8 = int_to_ptr.vmem [resolvable:$true] %s214_s8 }
  0x42   : > { %s4823_s11 = scalar_lea.hbm %s5919_s2, 32 }
  0x43   : > { %p4824_p6 = scmp.ne.s32.totalorder %s5919_s2, %s4823_s11  ;;  %p4830_p5 = scmp.lt.u32.totalorder %s4823_s11, %s5919_s2 }
  0x45   : > { %p4826_p10 = pnand %p4824_p6, %p5093_p13 }
  0x47   : > { %p4827_p3 = pneg %p4826_p10 }
  0x49   : > { %p4832_p7 = pnand %p4830_p5, %p4827_p3 }
  0x4b   : > { %4835 = shalt.err (!%p4832_p7)
}
  0x4c   : > { %s4836_s14 = scalar_lea.vmem %s191_s30, 32  ;;  %p4844_p1 = scmp.lt.s32.totalorder %s191_s30, %s191_s30 }
  0x4d   : > { %p4837_p9 = scmp.ne.s32.totalorder %s191_s30, %s4836_s14  ;;  %p4845_p2 = scmp.lt.s32.totalorder %s4836_s14, %s4836_s14 }
  0x4f   : > { %p4839_p12 = pnand %p4837_p9, %p5093_p13  ;;  %p4846_p4 = por %p4845_p2, %p4844_p1 }
  0x51   : > { %p4840_p0 = pneg %p4839_p12 }
  0x53   : > { %p4847_p8 = pnand %p4846_p4, %p4840_p0 }
  0x55   : > { %4850 = shalt.err (!%p4847_p8)
}
  0x56   : > { %4235 = dma.hbm_to_vmem [thread:$0]  (!%p5079_p11), %s5919_s2, 32, %s191_s30, [#allocation6]  }
  0x57   : > { %s4851_s9 = scalar_lea.hbm %s5921_s4, 16 }
  0x58   : > { %p4852_p6 = scmp.ne.s32.totalorder %s5921_s4, %s4851_s9  ;;  %p4858_p4 = scmp.lt.u32.totalorder %s4851_s9, %s5921_s4 }
  0x5a   : > { %p4854_p10 = pnand %p4852_p6, %p5093_p13 }
  0x5c   : > { %p4855_p3 = pneg %p4854_p10 }
  0x5e   : > { %p4860_p8 = pnand %p4858_p4, %p4855_p3 }
  0x60   : > { %4863 = shalt.err (!%p4860_p8)
}
  0x61   : > { %s4864_s30 = scalar_lea.vmem %s5139_s8, 16  ;;  %s4871_s17 = scalar_lea.vmem %s5139_s8, 32 }
  0x62   : > { %p4865_p5 = scmp.ne.s32.totalorder %s5139_s8, %s4864_s30  ;;  %p4872_p12 = scmp.lt.s32.totalorder %s5139_s8, %s5139_s8 }
  0x63   : > { %p4873_p0 = scmp.lt.s32.totalorder %s4871_s17, %s4864_s30 }
  0x64   : > { %p4867_p7 = pnand %p4865_p5, %p5093_p13 }
  0x65   : > { %p4874_p1 = por %p4873_p0, %p4872_p12 }
  0x66   : > { %p4868_p9 = pneg %p4867_p7 }
  0x68   : > { %p4875_p2 = pnand %p4874_p1, %p4868_p9 }
  0x6a   : > { %4878 = shalt.err (!%p4875_p2)
}
  0x6b   : > { %4241 = dma.hbm_to_vmem [thread:$0]  (!%p5079_p11), %s5921_s4, 16, %s5139_s8, [#allocation9]  }
  0x6c   : > { %s5184_s12 = sadd.s32 1, %s4983_s21   ;;  %s30_s15 = sadd.s32 1, %s4979_s20 }
  0x6d   : > { %s27_s29 = ssub.s32 %s4983_s21, %s5184_s12  ;;  %p37_p6 = scmp.ne.s32.totalorder %s4979_s20, %s4975_s19 }
  0x6e   : > { %p28_p13 = scmp.eq.s32.totalorder %s27_s29, 0  ;;  %p38_p10 = scmp.eq.s32.totalorder %s4983_s21, 0 }
  0x6f   : > { %p5931_p4 = scmp.eq.s32.totalorder %s5049_s22, 1  ;;  %p4254_p5 = scmp.lt.s32.totalorder %s4983_s21, 2 }
  0x70   : > { %s5193_s23 = scalar_select %p28_p13, %s4979_s20, %s30_s15  }
  0x71   : > { %p39_p3 = por %p38_p10, %p37_p6  ;;  %p5197_p8 = por %p5931_p4, %p37_p6 }
  0x72   : > { %s225_s7 = sand.u32 1, %s4979_s20   ;;  %s3855_s8 = sshll.u32 %s4983_s21, 15 }
  0x73   : > { %s3565_s9 = sshll.u32 %s225_s7, 11  ;;  %s5207_s13 = scalar_lea.hbm %s5917_s0, %s3855_s8 }
  0x74   : > { %s229_s28 = scalar_lea.vmem [#allocation2], %s3565_s9  ;;  %p5211_p11 = pnand %p4254_p5, %p39_p3 }
  0x75   : > { %s237_s30 = sshll.u32 %s229_s28, 4  ;;  %s5215_s6 = scalar_lea.sflag [#allocation3], %s225_s7  ;;  %s5209_s30 = int_to_ptr.vmem [resolvable:$true] %s237_s30 }
  0x76   : > { %s4879_s14 = scalar_lea.hbm %s5207_s13, 32768  ;;  %p4881_p9 = pneg %p5211_p11 }
  0x77   : > { %p4880_p7 = scmp.ne.s32.totalorder %s5207_s13, %s4879_s14  ;;  %s4884_s9 = scalar_lea.hbm %s5917_s0, 65536 }
  0x78   : > { %p4885_p1 = scmp.lt.u32.totalorder %s5207_s13, %s5917_s0  ;;  %p4886_p2 = scmp.lt.u32.totalorder %s4884_s9, %s4879_s14 }
  0x79   : > { %p4882_p12 = pnand %p4881_p9, %p4880_p7  ;;  %p4888_p6 = scmp.lt.u32.totalorder %s4879_s14, %s5207_s13 }
  0x7a   : > { %p4887_p13 = por %p4886_p2, %p4885_p1 }
  0x7b   : > { %p4883_p0 = pneg %p4882_p12 }
  0x7c   : > { %p4889_p10 = por %p4888_p6, %p4887_p13 }
  0x7e   : > { %p4890_p3 = pnand %p4889_p10, %p4883_p0 }
  0x80   : > { %4893 = shalt.err (!%p4890_p3)
}
  0x81   : > { %s4894_s7 = scalar_lea.vmem %s5209_s30, 32768  ;;  %s4993_s11 = smov [#allocation2]  }
  0x82   : > { %p4895_p4 = scmp.ne.s32.totalorder %s5209_s30, %s4894_s7  ;;  %s4899_s28 = sshll.u32 %s4993_s11, 4  ;;  %s4900_s28 = int_to_ptr.vmem [resolvable:$false] %s4899_s28 }
  0x83   : > { %s4901_s29 = scalar_lea.vmem %s4900_s28, 65536  ;;  %p4902_p12 = scmp.lt.s32.totalorder %s5209_s30, %s4900_s28 }
  0x84   : > { %p4897_p5 = pnand %p4895_p4, %p4881_p9  ;;  %p4903_p1 = scmp.lt.s32.totalorder %s4901_s29, %s4894_s7 }
  0x86   : > { %p4898_p7 = pneg %p4897_p5  ;;  %p4904_p2 = por %p4903_p1, %p4902_p12 }
  0x88   : > { %p4905_p13 = pnand %p4904_p2, %p4898_p7 }
  0x8a   : > { %4908 = shalt.err (!%p4905_p13)
}
  0x8b   : > { %s4994_s14 = smov 2048   ;;  %p5934_p9 = scmp.ne.s32.totalorder %s5928_s26, 0 }
  0x8c   : > { %4245 = dma.hbm_to_vmem [thread:$0]  (!%p5211_p11), %s5207_s13, 32768, %s5209_s30, %s5215_s6, %s4994_s14, %s4994_s14, %s4987_s16  }
  0x8d   : > { %249 = sbr.rel (%p5934_p9) target bundleno = 999 (0x3e7), region = 40  ;;  %s5247_s15 = sand.u32 (!%p5934_p9), 1, %s4975_s19  }
  0x8e   : > { %s3570_s9 = sshll.u32 (!%p5934_p9), %s5247_s15, 11  ;;  %s252_s8 = scalar_lea.sflag (!%p5934_p9), [#allocation3], %s5247_s15 }
  0x8f   : > { %s5251_s10 = scalar_lea.vmem (!%p5934_p9), [#allocation2], %s3570_s9  ;;  %p5935_p0 = scmp.ne.s32.totalorder (!%p5934_p9), %s5926_s24, 0 }
  0x94   : > { %4954 = dma.done.wait (%p5935_p0), %s252_s8, 32768  }
  0x95   : > { %4956 = vsyncadd (%p5935_p0), %s252_s8, 4294934528  ;;  %p5936_p11 = scmp.eq.s32.totalorder %s5049_s22, 0 }
  0x97   : > { %4958 = dma.done.wait (%p5936_p11), [#allocation6], 32800   ;;  %p5937_p6 = pmov %p5936_p11 }
  0x99   : > { %4960 = vsyncadd (%p5937_p6), [#allocation6], 4294934496  ;;  %p5938_p10 = pmov %p5937_p6 }
  0x9a   : > { %p5939_p3 = pmov %p5937_p6 }
  0x9b   : > { %4962 = dma.done.wait (%p5938_p10), [#allocation9], 2064  }
  0x9c   : > { %4964 = vsyncadd (%p5939_p3), [#allocation9], 4294965232  ;;  %v4303_v0 = vld [vmem:[#allocation5 + $0x4] ss:$8 sps:$4 sm:$0xff]   ;;  %v4307_v2 = vld [vmem:[#allocation5] ss:$8 sps:$4 sm:$0xff]  }
  0x9d   : > { %v4305_v1 = vld [vmem:[#allocation5 + $0x304] ss:$8 sps:$4 sm:$0xff]   ;;  %2233 = vmatprep.subr.bf16.mxu1 %v4303_v0  ;;  %v4308_v3 = vld [vmem:[#allocation5 + $0x300] ss:$8 sps:$4 sm:$0xff]   ;;  %v4309_v4 = vld [vmem:[#allocation5 + $0x14] ss:$8 sps:$4 sm:$0xff]  }
  0x9e   : > { %2572 = vmatprep.subr.bf16.mxu0 %v4305_v1  ;;  %2234 = vmatpush1.bf16.msra.mxu1 %v4307_v2  ;;  %v4311_v5 = vld [vmem:[#allocation5 + $0x314] ss:$8 sps:$4 sm:$0xff]   ;;  %v4313_v6 = vld [vmem:[#allocation5 + $0x10] ss:$8 sps:$4 sm:$0xff]   ;;  %v4315_v8 = vld [vmem:[#allocation5 + $0x24] ss:$8 sps:$4 sm:$0xff]  }
  0x9f   : > { %2573 = vmatpush1.bf16.msra.mxu0 %v4308_v3  ;;  %2235 = vmatprep.subr.bf16.mxu1 %v4309_v4  ;;  %v4314_v7 = vld [vmem:[#allocation5 + $0x310] ss:$8 sps:$4 sm:$0xff]   ;;  %v4317_v9 = vld [vmem:[#allocation5 + $0x324] ss:$8 sps:$4 sm:$0xff]   ;;  %v4319_v10 = vld [vmem:[#allocation5 + $0x20] ss:$8 sps:$4 sm:$0xff]  }
  0xa0   : > { %2574 = vmatprep.subr.bf16.mxu0 %v4311_v5  ;;  %v4320_v11 = vld [vmem:[#allocation5 + $0x320] ss:$8 sps:$4 sm:$0xff]   ;;  %v4321_v12 = vld [vmem:[#allocation5 + $0x34] ss:$8 sps:$4 sm:$0xff]   ;;  %v4325_v14 = vld [vmem:[#allocation5 + $0x30] ss:$8 sps:$4 sm:$0xff]  }
  0xa1   : > { %v4323_v13 = vld [vmem:[#allocation5 + $0x334] ss:$8 sps:$4 sm:$0xff]   ;;  %v4326_v15 = vld [vmem:[#allocation5 + $0x330] ss:$8 sps:$4 sm:$0xff]   ;;  %v4327_v16 = vld [vmem:[#allocation5 + $0x44] ss:$8 sps:$4 sm:$0xff]  }
  0xa2   : > { %2236 = vmatpush1.bf16.msra.mxu1 %v4313_v6  ;;  %v4329_v17 = vld [vmem:[#allocation5 + $0x344] ss:$8 sps:$4 sm:$0xff]   ;;  %v4331_v18 = vld [vmem:[#allocation5 + $0x40] ss:$8 sps:$4 sm:$0xff]   ;;  %v4333_v20 = vld [vmem:[#allocation5 + $0x54] ss:$8 sps:$4 sm:$0xff]  }
  0xa3   : > { %2575 = vmatpush1.bf16.msra.mxu0 %v4314_v7  ;;  %2237 = vmatprep.subr.bf16.mxu1 %v4315_v8  ;;  %v4332_v19 = vld [vmem:[#allocation5 + $0x340] ss:$8 sps:$4 sm:$0xff]   ;;  %v4335_v21 = vld [vmem:[#allocation5 + $0x354] ss:$8 sps:$4 sm:$0xff]   ;;  %v4337_v22 = vld [vmem:[#allocation5 + $0x50] ss:$8 sps:$4 sm:$0xff]  }
  0xa4   : > { %2576 = vmatprep.subr.bf16.mxu0 %v4317_v9  ;;  %v4338_v23 = vld [vmem:[#allocation5 + $0x350] ss:$8 sps:$4 sm:$0xff]   ;;  %v4339_v24 = vld [vmem:[#allocation5 + $0x64] ss:$8 sps:$4 sm:$0xff]   ;;  %v4343_v26 = vld [vmem:[#allocation5 + $0x60] ss:$8 sps:$4 sm:$0xff]  }
  0xa5   : > { %v4341_v25 = vld [vmem:[#allocation5 + $0x364] ss:$8 sps:$4 sm:$0xff]   ;;  %v4344_v27 = vld [vmem:[#allocation5 + $0x360] ss:$8 sps:$4 sm:$0xff]   ;;  %v4345_v28 = vld [vmem:[#allocation5 + $0x74] ss:$8 sps:$4 sm:$0xff]  }
  0xa6   : > { %2238 = vmatpush1.bf16.msra.mxu1 %v4319_v10  ;;  %v4347_v29 = vld [vmem:[#allocation5 + $0x374] ss:$8 sps:$4 sm:$0xff]   ;;  %v4349_v30 = vld [vmem:[#allocation5 + $0x70] ss:$8 sps:$4 sm:$0xff]   ;;  %v4351_v32 = vld [vmem:[#allocation5 + $0x84] ss:$8 sps:$4 sm:$0xff]  }
  0xa7   : > { %2577 = vmatpush1.bf16.msra.mxu0 %v4320_v11  ;;  %2239 = vmatprep.subr.bf16.mxu1 %v4321_v12  ;;  %v4350_v31 = vld [vmem:[#allocation5 + $0x370] ss:$8 sps:$4 sm:$0xff]   ;;  %v4353_v33 = vld [vmem:[#allocation5 + $0x384] ss:$8 sps:$4 sm:$0xff]   ;;  %v4355_v34 = vld [vmem:[#allocation5 + $0x80] ss:$8 sps:$4 sm:$0xff]  }
  0xa8   : > { %2578 = vmatprep.subr.bf16.mxu0 %v4323_v13  ;;  %v4356_v35 = vld [vmem:[#allocation5 + $0x380] ss:$8 sps:$4 sm:$0xff]   ;;  %v4357_v36 = vld [vmem:[#allocation5 + $0x94] ss:$8 sps:$4 sm:$0xff]   ;;  %v4361_v38 = vld [vmem:[#allocation5 + $0x90] ss:$8 sps:$4 sm:$0xff]  }
  0xa9   : > { %v4359_v37 = vld [vmem:[#allocation5 + $0x394] ss:$8 sps:$4 sm:$0xff]   ;;  %v4362_v39 = vld [vmem:[#allocation5 + $0x390] ss:$8 sps:$4 sm:$0xff]   ;;  %v4363_v40 = vld [vmem:[#allocation5 + $0xa4] ss:$8 sps:$4 sm:$0xff]  }
  0xaa   : > { %2240 = vmatpush1.bf16.msra.mxu1 %v4325_v14  ;;  %v4365_v41 = vld [vmem:[#allocation5 + $0x3a4] ss:$8 sps:$4 sm:$0xff]   ;;  %v4367_v42 = vld [vmem:[#allocation5 + $0xa0] ss:$8 sps:$4 sm:$0xff]   ;;  %v4369_v44 = vld [vmem:[#allocation5 + $0xb4] ss:$8 sps:$4 sm:$0xff]  }
  0xab   : > { %2579 = vmatpush1.bf16.msra.mxu0 %v4326_v15  ;;  %2241 = vmatprep.subr.bf16.mxu1 %v4327_v16  ;;  %v4368_v43 = vld [vmem:[#allocation5 + $0x3a0] ss:$8 sps:$4 sm:$0xff]   ;;  %v4371_v45 = vld [vmem:[#allocation5 + $0x3b4] ss:$8 sps:$4 sm:$0xff]   ;;  %v4373_v50 = vld [vmem:[#allocation5 + $0xb0] ss:$8 sps:$4 sm:$0xff]  }
  0xac   : > { %2580 = vmatprep.subr.bf16.mxu0 %v4329_v17  ;;  %v302_v46 = vld [vmem:[%s5251_s10 + $0x8] sm:$0xff]  ;;  %v308_v48 = vld [vmem:[%s5251_s10 + $0x38] sm:$0xff]  ;;  %v301_v6 = vld [vmem:[%s5251_s10] sm:$0xff]  ;;  %s3575_s24 = sshll.u32 %s5247_s15, 7  ;;  %s3856_s16 = sshll.u32 %s5049_s22, 11 }
  0xad   : > { %v318_v47 = vld [vmem:[%s5251_s10 + $0x88] sm:$0xff]  ;;  %v324_v49 = vld [vmem:[%s5251_s10 + $0xb8] sm:$0xff]  ;;  %v317_v7 = vld [vmem:[%s5251_s10 + $0x80] sm:$0xff]  ;;  %s5833_s26 = scalar_lea.vmem [#allocation11], %s3575_s24  ;;  %s5868_s6 = scalar_lea.hbm %s5922_s5, %s3856_s16 }
  0xae   : > { %2242 = vmatpush1.bf16.msra.mxu1 %v4331_v18  ;;  %v4374_v51 = vld [vmem:[#allocation5 + $0x3b0] ss:$8 sps:$4 sm:$0xff]   ;;  %v558_v52 = vpack.c.bf16 %v318_v47, %v302_v46  ;;  %v564_v53 = vpack.c.bf16 %v324_v49, %v308_v48  ;;  %v4375_v54 = vld [vmem:[#allocation5 + $0xc4] ss:$8 sps:$4 sm:$0xff]   ;;  %v4379_v56 = vld [vmem:[#allocation5 + $0xc0] ss:$8 sps:$4 sm:$0xff]   ;;  %v557_v16 = vpack.c.bf16 %v317_v7, %v301_v6 }
  0xaf   : > { %2581 = vmatpush1.bf16.msra.mxu0 %v4332_v19  ;;  %2243 = vmatprep.subr.bf16.mxu1 %v4333_v20  ;;  %v4377_v55 = vld [vmem:[#allocation5 + $0x3c4] ss:$8 sps:$4 sm:$0xff]   ;;  %v4380_v57 = vld [vmem:[#allocation5 + $0x3c0] ss:$8 sps:$4 sm:$0xff]   ;;  %v4381_v58 = vld [vmem:[#allocation5 + $0xd4] ss:$8 sps:$4 sm:$0xff]  }
  0xb0   : > { %2582 = vmatprep.subr.bf16.mxu0 %v4335_v21  ;;  %2265 = vmatprep.mubr.bf16.mxu1 %v558_v52  ;;  %v4383_v59 = vld [vmem:[#allocation5 + $0x3d4] ss:$8 sps:$4 sm:$0xff]   ;;  %v4385_v60 = vld [vmem:[#allocation5 + $0xd0] ss:$8 sps:$4 sm:$0xff]   ;;  %v4387_v62 = vld [vmem:[#allocation5 + $0xe4] ss:$8 sps:$4 sm:$0xff]  }
  0xb1   : > { %2604 = vmatprep.mubr.bf16.mxu0 %v564_v53  ;;  %v4386_v61 = vld [vmem:[#allocation5 + $0x3d0] ss:$8 sps:$4 sm:$0xff]   ;;  %v4389_v63 = vld [vmem:[#allocation5 + $0x3e4] ss:$8 sps:$4 sm:$0xff]   ;;  %v4391_v0 = vld [vmem:[#allocation5 + $0xe0] ss:$8 sps:$4 sm:$0xff]  }
  0xb2   : > { %2244 = vmatpush1.bf16.msra.mxu1 %v4337_v22  ;;  %v4392_v1 = vld [vmem:[#allocation5 + $0x3e0] ss:$8 sps:$4 sm:$0xff]   ;;  %v4393_v2 = vld [vmem:[#allocation5 + $0xf4] ss:$8 sps:$4 sm:$0xff]   ;;  %v4397_v4 = vld [vmem:[#allocation5 + $0xf0] ss:$8 sps:$4 sm:$0xff]  }
  0xb3   : > { %2583 = vmatpush1.bf16.msra.mxu0 %v4338_v23  ;;  %2245 = vmatprep.subr.bf16.mxu1 %v4339_v24  ;;  %v4395_v3 = vld [vmem:[#allocation5 + $0x3f4] ss:$8 sps:$4 sm:$0xff]   ;;  %v4398_v5 = vld [vmem:[#allocation5 + $0x3f0] ss:$8 sps:$4 sm:$0xff]   ;;  %v4401_v10 = vld [vmem:[#allocation5 + $0x104] ss:$8 sps:$4 sm:$0xff]  }
  0xb4   : > { %2584 = vmatprep.subr.bf16.mxu0 %v4341_v25  ;;  %v307_v8 = vld [vmem:[%s5251_s10 + $0x30] sm:$0xff]  ;;  %v4404_v11 = vld [vmem:[#allocation5 + $0x404] ss:$8 sps:$4 sm:$0xff]   ;;  %v4399_v12 = vld [vmem:[#allocation5 + $0x100] ss:$8 sps:$4 sm:$0xff]   ;;  %s3447_s13 = sshll.u32 %s5833_s26, 4  ;;  %s5870_s13 = int_to_ptr.vmem [resolvable:$true] %s3447_s13 }
  0xb5   : > { %v323_v9 = vld [vmem:[%s5251_s10 + $0xb0] sm:$0xff]  ;;  %v4402_v13 = vld [vmem:[#allocation5 + $0x400] ss:$8 sps:$4 sm:$0xff]   ;;  %v340_v18 = vld [vmem:[%s5251_s10 + $0x138] sm:$0xff]  ;;  %s3434_s22 = scalar_lea.sflag [#allocation4], %s5247_s15  ;;  %s4909_s7 = scalar_lea.vmem %s5870_s13, 2048 }
  0xb6   : > { %2246 = vmatpush1.bf16.msra.mxu1 %v4343_v26  ;;  %v334_v14 = vld [vmem:[%s5251_s10 + $0x108] sm:$0xff]  ;;  %v563_v17 = vpack.c.bf16 %v323_v9, %v307_v8  ;;  %v356_v19 = vld [vmem:[%s5251_s10 + $0x1b8] sm:$0xff]  ;;  %v333_v26 = vld [vmem:[%s5251_s10 + $0x100] sm:$0xff]  ;;  %p4910_p4 = scmp.ne.s32.totalorder %s5870_s13, %s4909_s7  ;;  %s4995_s11 = smov [#allocation11]  }
  0xb7   : > { %2585 = vmatpush1.bf16.msra.mxu0 %v4344_v27  ;;  %2247 = vmatprep.subr.bf16.mxu1 %v4345_v28  ;;  %v350_v15 = vld [vmem:[%s5251_s10 + $0x188] sm:$0xff]  ;;  %v4407_v20 = vld [vmem:[#allocation5 + $0x114] ss:$8 sps:$4 sm:$0xff]   ;;  %v4405_v22 = vld [vmem:[#allocation5 + $0x110] ss:$8 sps:$4 sm:$0xff]   ;;  %v580_v24 = vpack.c.bf16 %v356_v19, %v340_v18  ;;  %s4913_s28 = sshll.u32 %s4995_s11, 4  ;;  %s4914_s28 = int_to_ptr.vmem [resolvable:$false] %s4913_s28 }
  0xb8   : > { %2586 = vmatprep.subr.bf16.mxu0 %v4347_v29  ;;  %v4410_v21 = vld [vmem:[#allocation5 + $0x414] ss:$8 sps:$4 sm:$0xff]   ;;  %v574_v23 = vpack.c.bf16 %v350_v15, %v334_v14  ;;  %v4408_v25 = vld [vmem:[#allocation5 + $0x410] ss:$8 sps:$4 sm:$0xff]   ;;  %v349_v27 = vld [vmem:[%s5251_s10 + $0x180] sm:$0xff]  ;;  %p4911_p5 = pnand %p4910_p4, %p5197_p8  ;;  %s4915_s29 = scalar_lea.vmem %s4914_s28, 4096 }
  0xb9   : > { %v339_v28 = vld [vmem:[%s5251_s10 + $0x130] sm:$0xff]  ;;  %v365_v46 = vld [vmem:[%s5251_s10 + $0x200] sm:$0xff]  ;;  %v436_v14 = vld [vmem:[%s5251_s10 + $0x438] sm:$0xff]  ;;  %p4916_p12 = scmp.lt.s32.totalorder %s5870_s13, %s4914_s28  ;;  %p4917_p1 = scmp.lt.s32.totalorder %s4915_s29, %s4909_s7 }
  0xba   : > { %2248 = vmatpush1.bf16.msra.mxu1 %v4349_v30  ;;  %v355_v29 = vld [vmem:[%s5251_s10 + $0x1b0] sm:$0xff]  ;;  %v4413_v30 = vld [vmem:[#allocation5 + $0x124] ss:$8 sps:$4 sm:$0xff]   ;;  %v4423_v52 = vld [vmem:[#allocation5 + $0x140] ss:$8 sps:$4 sm:$0xff]   ;;  %p4912_p7 = pneg %p4911_p5 }
  0xbb   : > { %2587 = vmatpush1.bf16.msra.mxu0 %v4350_v31  ;;  %2249 = vmatprep.subr.bf16.mxu1 %v4351_v32  ;;  %v4416_v31 = vld [vmem:[#allocation5 + $0x424] ss:$8 sps:$4 sm:$0xff]   ;;  %v4411_v32 = vld [vmem:[#allocation5 + $0x120] ss:$8 sps:$4 sm:$0xff]   ;;  %v371_v48 = vld [vmem:[%s5251_s10 + $0x230] sm:$0xff]  ;;  %p4918_p2 = por %p4917_p1, %p4916_p12 }
  0xbc   : > { %2588 = vmatprep.subr.bf16.mxu0 %v4353_v33  ;;  %v4414_v33 = vld [vmem:[#allocation5 + $0x420] ss:$8 sps:$4 sm:$0xff]   ;;  %v387_v49 = vld [vmem:[%s5251_s10 + $0x2b0] sm:$0xff]  ;;  %v4437_v6 = vld [vmem:[#allocation5 + $0x164] ss:$8 sps:$4 sm:$0xff]  }
  0xbd   : > { %v381_v47 = vld [vmem:[%s5251_s10 + $0x280] sm:$0xff]  ;;  %v452_v15 = vld [vmem:[%s5251_s10 + $0x4b8] sm:$0xff]  ;;  %p4919_p13 = pnand %p4918_p2, %p4912_p7 }
  0xbe   : > { %2250 = vmatpush1.bf16.msra.mxu1 %v4355_v34  ;;  %v366_v34 = vld [vmem:[%s5251_s10 + $0x208] sm:$0xff]  ;;  %v4441_v18 = vld [vmem:[#allocation5 + $0x170] ss:$8 sps:$4 sm:$0xff]  }
  0xbf   : > { %2589 = vmatpush1.bf16.msra.mxu0 %v4356_v35  ;;  %2251 = vmatprep.subr.bf16.mxu1 %v4357_v36  ;;  %v382_v35 = vld [vmem:[%s5251_s10 + $0x288] sm:$0xff]  ;;  %v573_v36 = vpack.c.bf16 %v349_v27, %v333_v26 }
  0xc0   : > { %2590 = vmatprep.subr.bf16.mxu0 %v4359_v37  ;;  %v579_v37 = vpack.c.bf16 %v355_v29, %v339_v28  ;;  %v4426_v53 = vld [vmem:[#allocation5 + $0x440] ss:$8 sps:$4 sm:$0xff]   ;;  %v4440_v7 = vld [vmem:[#allocation5 + $0x464] ss:$8 sps:$4 sm:$0xff]  }
  0xc1   : > { %v4435_v8 = vld [vmem:[#allocation5 + $0x160] ss:$8 sps:$4 sm:$0xff]   ;;  %v4449_v26 = vld [vmem:[#allocation5 + $0x184] ss:$8 sps:$4 sm:$0xff]  }
  0xc2   : > { %2252 = vmatpush1.bf16.msra.mxu1 %v4361_v38  ;;  %v372_v38 = vld [vmem:[%s5251_s10 + $0x238] sm:$0xff]  ;;  %v4438_v9 = vld [vmem:[#allocation5 + $0x460] ss:$8 sps:$4 sm:$0xff]   ;;  %v4452_v27 = vld [vmem:[#allocation5 + $0x484] ss:$8 sps:$4 sm:$0xff]  }
  0xc3   : > { %2591 = vmatpush1.bf16.msra.mxu0 %v4362_v39  ;;  %2253 = vmatprep.subr.bf16.mxu1 %v4363_v40  ;;  %v388_v39 = vld [vmem:[%s5251_s10 + $0x2b8] sm:$0xff]  ;;  %v4447_v28 = vld [vmem:[#allocation5 + $0x180] ss:$8 sps:$4 sm:$0xff]  }
  0xc4   : > { %2592 = vmatprep.subr.bf16.mxu0 %v4365_v41  ;;  %v4419_v40 = vld [vmem:[#allocation5 + $0x134] ss:$8 sps:$4 sm:$0xff]   ;;  %v4450_v29 = vld [vmem:[#allocation5 + $0x480] ss:$8 sps:$4 sm:$0xff]  }
  0xc5   : > { %v4422_v41 = vld [vmem:[#allocation5 + $0x434] ss:$8 sps:$4 sm:$0xff]  }
  0xc6   : > { %2254 = vmatpush1.bf16.msra.mxu1 %v4367_v42  ;;  %v4417_v42 = vld [vmem:[#allocation5 + $0x130] ss:$8 sps:$4 sm:$0xff]  }
  0xc7   : > { %2593 = vmatpush1.bf16.msra.mxu0 %v4368_v43  ;;  %2255 = vmatprep.subr.bf16.mxu1 %v4369_v44  ;;  %v590_v43 = vpack.c.bf16 %v382_v35, %v366_v34  ;;  %v596_v44 = vpack.c.bf16 %v388_v39, %v372_v38  ;;  %v468_v34 = vld [vmem:[%s5251_s10 + $0x538] sm:$0xff] }
  0xc8   : > { %2594 = vmatprep.subr.bf16.mxu0 %v4371_v45  ;;  %v4420_v45 = vld [vmem:[#allocation5 + $0x430] ss:$8 sps:$4 sm:$0xff]  }
  0xc9   : > { %v484_v35 = vld [vmem:[%s5251_s10 + $0x5b8] sm:$0xff] }
  0xca   : > { %2256 = vmatpush1.bf16.msra.mxu1 %v4373_v50  ;;  %v4425_v50 = vld [vmem:[#allocation5 + $0x144] ss:$8 sps:$4 sm:$0xff]   ;;  %v4453_v38 = vld [vmem:[#allocation5 + $0x190] ss:$8 sps:$4 sm:$0xff]  }
  0xcb   : > { %2595 = vmatpush1.bf16.msra.mxu0 %v4374_v51  ;;  %2257 = vmatprep.subr.bf16.mxu1 %v4375_v54  ;;  %v4428_v51 = vld [vmem:[#allocation5 + $0x444] ss:$8 sps:$4 sm:$0xff]  }
  0xcc   : > { %2596 = vmatprep.subr.bf16.mxu0 %v4377_v55  ;;  %v398_v54 = vld [vmem:[%s5251_s10 + $0x308] sm:$0xff] }
  0xcd   : > { %v414_v55 = vld [vmem:[%s5251_s10 + $0x388] sm:$0xff] }
  0xce   : > { %2258 = vmatpush1.bf16.msra.mxu1 %v4379_v56  ;;  %v589_v56 = vpack.c.bf16 %v381_v47, %v365_v46  ;;  %v4461_v46 = vld [vmem:[#allocation5 + $0x1a4] ss:$8 sps:$4 sm:$0xff]  }
  0xcf   : > { %2597 = vmatpush1.bf16.msra.mxu0 %v4380_v57  ;;  %2259 = vmatprep.subr.bf16.mxu1 %v4381_v58  ;;  %v595_v57 = vpack.c.bf16 %v387_v49, %v371_v48  ;;  %v404_v58 = vld [vmem:[%s5251_s10 + $0x338] sm:$0xff]  ;;  %v4464_v47 = vld [vmem:[#allocation5 + $0x4a4] ss:$8 sps:$4 sm:$0xff]   ;;  %v4459_v48 = vld [vmem:[#allocation5 + $0x1a0] ss:$8 sps:$4 sm:$0xff]  }
  0xd0   : > { %2598 = vmatprep.subr.bf16.mxu0 %v4383_v59  ;;  %v420_v59 = vld [vmem:[%s5251_s10 + $0x3b8] sm:$0xff]  ;;  %v4462_v49 = vld [vmem:[#allocation5 + $0x4a0] ss:$8 sps:$4 sm:$0xff]  }
  0xd2   : > { %2260 = vmatpush1.bf16.msra.mxu1 %v4385_v60  ;;  %v4431_v60 = vld [vmem:[#allocation5 + $0x154] ss:$8 sps:$4 sm:$0xff]  }
  0xd3   : > { %2599 = vmatpush1.bf16.msra.mxu0 %v4386_v61  ;;  %2261 = vmatprep.subr.bf16.mxu1 %v4387_v62  ;;  %v4434_v61 = vld [vmem:[#allocation5 + $0x454] ss:$8 sps:$4 sm:$0xff]   ;;  %v4429_v62 = vld [vmem:[#allocation5 + $0x150] ss:$8 sps:$4 sm:$0xff]  }
  0xd4   : > { %2600 = vmatprep.subr.bf16.mxu0 %v4389_v63  ;;  %v606_v63 = vpack.c.bf16 %v414_v55, %v398_v54  ;;  %v500_v54 = vld [vmem:[%s5251_s10 + $0x638] sm:$0xff] }
  0xd5   : > { %v516_v55 = vld [vmem:[%s5251_s10 + $0x6b8] sm:$0xff] }
  0xd6   : > { %2262 = vmatpush1.bf16.msra.mxu1 %v4391_v0  ;;  %v612_v0 = vpack.c.bf16 %v420_v59, %v404_v58  ;;  %v4465_v58 = vld [vmem:[#allocation5 + $0x1b0] ss:$8 sps:$4 sm:$0xff]  }
  0xd7   : > { %2601 = vmatpush1.bf16.msra.mxu0 %v4392_v1  ;;  %2263 = vmatprep.subr.bf16.mxu1 %v4393_v2  ;;  %v4432_v1 = vld [vmem:[#allocation5 + $0x450] ss:$8 sps:$4 sm:$0xff]   ;;  %v397_v2 = vld [vmem:[%s5251_s10 + $0x300] sm:$0xff] }
  0xd8   : > { %2602 = vmatprep.subr.bf16.mxu0 %v4395_v3  ;;  %v413_v3 = vld [vmem:[%s5251_s10 + $0x380] sm:$0xff] }
  0xda   : > { %2264 = vmatpush1.bf16.msra.mxu1 %v4397_v4  ;;  %v403_v4 = vld [vmem:[%s5251_s10 + $0x330] sm:$0xff] }
  0xdb   : > { %2603 = vmatpush1.bf16.msra.mxu0 %v4398_v5  ;;  %2346 = vmatprep.subr.bf16.mxu1 %v4401_v10  ;;  %v419_v5 = vld [vmem:[%s5251_s10 + $0x3b0] sm:$0xff]  ;;  %v430_v10 = vld [vmem:[%s5251_s10 + $0x408] sm:$0xff] }
  0xdc   : > { %2685 = vmatprep.subr.bf16.mxu0 %v4404_v11  ;;  %v446_v11 = vld [vmem:[%s5251_s10 + $0x488] sm:$0xff] }
  0xdd   : > { %2266 = vmatmul.mubr.bf16.vlgmr.msra.gmra.mrb[0].mxu1 %v557_v16  ;;  %v4443_v16 = vld [vmem:[#allocation5 + $0x174] ss:$8 sps:$4 sm:$0xff]   ;;  %v622_v19 = vpack.c.bf16 %v446_v11, %v430_v10 }
  0xde   : > { %2605 = vmatmul.mubr.bf16.vlgmr.msra.gmra.mrb[0].mxu0 %v563_v17  ;;  %2347 = vmatpush1.bf16.msra.mxu1 %v4399_v12  ;;  %v605_v12 = vpack.c.bf16 %v413_v3, %v397_v2  ;;  %v4446_v17 = vld [vmem:[#allocation5 + $0x474] ss:$8 sps:$4 sm:$0xff]   ;;  %v4473_v2 = vld [vmem:[#allocation5 + $0x1c4] ss:$8 sps:$4 sm:$0xff]  }
  0xdf   : > { %2686 = vmatpush1.bf16.msra.mxu0 %v4402_v13  ;;  %2348 = vmatprep.subr.bf16.mxu1 %v4407_v20  ;;  %v611_v13 = vpack.c.bf16 %v419_v5, %v403_v4  ;;  %v628_v20 = vpack.c.bf16 %v452_v15, %v436_v14  ;;  %v4476_v3 = vld [vmem:[#allocation5 + $0x4c4] ss:$8 sps:$4 sm:$0xff]   ;;  %v4471_v4 = vld [vmem:[#allocation5 + $0x1c0] ss:$8 sps:$4 sm:$0xff]   ;;  %v532_v10 = vld [vmem:[%s5251_s10 + $0x738] sm:$0xff] }
  0xe0   : > { %2687 = vmatprep.subr.bf16.mxu0 %v4410_v21  ;;  %2275 = vmatprep.mubr.bf16.mxu1 %v574_v23  ;;  %v4444_v21 = vld [vmem:[#allocation5 + $0x470] ss:$8 sps:$4 sm:$0xff]   ;;  %v445_v23 = vld [vmem:[%s5251_s10 + $0x480] sm:$0xff] }
  0xe1   : > { %2614 = vmatprep.mubr.bf16.mxu0 %v580_v24  ;;  %v435_v24 = vld [vmem:[%s5251_s10 + $0x430] sm:$0xff]  ;;  %v4474_v5 = vld [vmem:[#allocation5 + $0x4c0] ss:$8 sps:$4 sm:$0xff]   ;;  %v548_v11 = vld [vmem:[%s5251_s10 + $0x7b8] sm:$0xff] }
  0xe2   : > { %2349 = vmatpush1.bf16.msra.mxu1 %v4405_v22  ;;  %v429_v22 = vld [vmem:[%s5251_s10 + $0x400] sm:$0xff]  ;;  %v4477_v14 = vld [vmem:[#allocation5 + $0x1d0] ss:$8 sps:$4 sm:$0xff]  }
  0xe3   : > { %2688 = vmatpush1.bf16.msra.mxu0 %v4408_v25  ;;  %2350 = vmatprep.subr.bf16.mxu1 %v4413_v30  ;;  %v451_v25 = vld [vmem:[%s5251_s10 + $0x4b0] sm:$0xff]  ;;  %v462_v30 = vld [vmem:[%s5251_s10 + $0x508] sm:$0xff] }
  0xe4   : > { %2689 = vmatprep.subr.bf16.mxu0 %v4416_v31  ;;  %v478_v31 = vld [vmem:[%s5251_s10 + $0x588] sm:$0xff] }
  0xe5   : > { %2276 = vmatmul.mubr.bf16.gmra.mrb[4].mxu1 %v573_v36  ;;  %v4455_v36 = vld [vmem:[#allocation5 + $0x194] ss:$8 sps:$4 sm:$0xff]   ;;  %v638_v39 = vpack.c.bf16 %v478_v31, %v462_v30  ;;  %v310_v30 = vld [vmem:[%s5251_s10 + $0x48] sm:$0xff] }
  0xe6   : > { %2615 = vmatmul.mubr.bf16.gmra.mrb[4].mxu0 %v579_v37  ;;  %2351 = vmatpush1.bf16.msra.mxu1 %v4411_v32  ;;  %v621_v32 = vpack.c.bf16 %v445_v23, %v429_v22  ;;  %v4458_v37 = vld [vmem:[#allocation5 + $0x494] ss:$8 sps:$4 sm:$0xff]   ;;  %v4485_v22 = vld [vmem:[#allocation5 + $0x1e4] ss:$8 sps:$4 sm:$0xff]  }
  0xe7   : > { %2690 = vmatpush1.bf16.msra.mxu0 %v4414_v33  ;;  %2352 = vmatprep.subr.bf16.mxu1 %v4419_v40  ;;  %v627_v33 = vpack.c.bf16 %v451_v25, %v435_v24  ;;  %v644_v40 = vpack.c.bf16 %v484_v35, %v468_v34  ;;  %v4488_v23 = vld [vmem:[#allocation5 + $0x4e4] ss:$8 sps:$4 sm:$0xff]   ;;  %v4483_v24 = vld [vmem:[#allocation5 + $0x1e0] ss:$8 sps:$4 sm:$0xff]   ;;  %v4489_v34 = vld [vmem:[#allocation5 + $0x1f0] ss:$8 sps:$4 sm:$0xff]  }
  0xe8   : > { %2691 = vmatprep.subr.bf16.mxu0 %v4422_v41  ;;  %2285 = vmatprep.mubr.bf16.mxu1 %v590_v43  ;;  %v4456_v41 = vld [vmem:[#allocation5 + $0x490] ss:$8 sps:$4 sm:$0xff]   ;;  %v477_v43 = vld [vmem:[%s5251_s10 + $0x580] sm:$0xff]  ;;  %v326_v31 = vld [vmem:[%s5251_s10 + $0xc8] sm:$0xff] }
  0xe9   : > { %2624 = vmatprep.mubr.bf16.mxu0 %v596_v44  ;;  %v467_v44 = vld [vmem:[%s5251_s10 + $0x530] sm:$0xff]  ;;  %v4486_v25 = vld [vmem:[#allocation5 + $0x4e0] ss:$8 sps:$4 sm:$0xff]  }
  0xea   : > { %2353 = vmatpush1.bf16.msra.mxu1 %v4417_v42  ;;  %v461_v42 = vld [vmem:[%s5251_s10 + $0x500] sm:$0xff] }
  0xeb   : > { %2692 = vmatpush1.bf16.msra.mxu0 %v4420_v45  ;;  %2354 = vmatprep.subr.bf16.mxu1 %v4425_v50  ;;  %v483_v45 = vld [vmem:[%s5251_s10 + $0x5b0] sm:$0xff]  ;;  %v494_v50 = vld [vmem:[%s5251_s10 + $0x608] sm:$0xff] }
  0xec   : > { %2693 = vmatprep.subr.bf16.mxu0 %v4428_v51  ;;  %v510_v51 = vld [vmem:[%s5251_s10 + $0x688] sm:$0xff] }
  0xed   : > { %2286 = vmatmul.mubr.bf16.gmra.mrb[8].mxu1 %v589_v56  ;;  %v4467_v56 = vld [vmem:[#allocation5 + $0x1b4] ss:$8 sps:$4 sm:$0xff]   ;;  %v654_v59 = vpack.c.bf16 %v510_v51, %v494_v50  ;;  %v342_v50 = vld [vmem:[%s5251_s10 + $0x148] sm:$0xff] }
  0xee   : > { %2625 = vmatmul.mubr.bf16.gmra.mrb[8].mxu0 %v595_v57  ;;  %2355 = vmatpush1.bf16.msra.mxu1 %v4423_v52  ;;  %v637_v52 = vpack.c.bf16 %v477_v43, %v461_v42  ;;  %v4470_v57 = vld [vmem:[#allocation5 + $0x4b4] ss:$8 sps:$4 sm:$0xff]   ;;  %v4497_v42 = vld [vmem:[#allocation5 + $0x204] ss:$8 sps:$4 sm:$0xff]  }
  0xef   : > { %2694 = vmatpush1.bf16.msra.mxu0 %v4426_v53  ;;  %2356 = vmatprep.subr.bf16.mxu1 %v4431_v60  ;;  %v643_v53 = vpack.c.bf16 %v483_v45, %v467_v44  ;;  %v660_v60 = vpack.c.bf16 %v516_v55, %v500_v54  ;;  %v4500_v43 = vld [vmem:[#allocation5 + $0x504] ss:$8 sps:$4 sm:$0xff]   ;;  %v4495_v44 = vld [vmem:[#allocation5 + $0x200] ss:$8 sps:$4 sm:$0xff]   ;;  %v4501_v54 = vld [vmem:[#allocation5 + $0x210] ss:$8 sps:$4 sm:$0xff]  }
  0xf0   : > { %2695 = vmatprep.subr.bf16.mxu0 %v4434_v61  ;;  %2295 = vmatprep.mubr.bf16.mxu1 %v606_v63  ;;  %v4468_v61 = vld [vmem:[#allocation5 + $0x4b0] ss:$8 sps:$4 sm:$0xff]   ;;  %v509_v63 = vld [vmem:[%s5251_s10 + $0x680] sm:$0xff]  ;;  %v358_v51 = vld [vmem:[%s5251_s10 + $0x1c8] sm:$0xff] }
  0xf1   : > { %2634 = vmatprep.mubr.bf16.mxu0 %v612_v0  ;;  %v499_v0 = vld [vmem:[%s5251_s10 + $0x630] sm:$0xff]  ;;  %v4498_v45 = vld [vmem:[#allocation5 + $0x500] ss:$8 sps:$4 sm:$0xff]  }
  0xf2   : > { %2357 = vmatpush1.bf16.msra.mxu1 %v4429_v62  ;;  %v493_v62 = vld [vmem:[%s5251_s10 + $0x600] sm:$0xff] }
  0xf3   : > { %2696 = vmatpush1.bf16.msra.mxu0 %v4432_v1  ;;  %2358 = vmatprep.subr.bf16.mxu1 %v4437_v6  ;;  %v515_v1 = vld [vmem:[%s5251_s10 + $0x6b0] sm:$0xff]  ;;  %v526_v6 = vld [vmem:[%s5251_s10 + $0x708] sm:$0xff] }
  0xf4   : > { %2697 = vmatprep.subr.bf16.mxu0 %v4440_v7  ;;  %v542_v7 = vld [vmem:[%s5251_s10 + $0x788] sm:$0xff] }
  0xf5   : > { %2296 = vmatmul.mubr.bf16.gmra.mrb[12].mxu1 %v605_v12  ;;  %v4479_v12 = vld [vmem:[#allocation5 + $0x1d4] ss:$8 sps:$4 sm:$0xff]   ;;  %v670_v15 = vpack.c.bf16 %v542_v7, %v526_v6  ;;  %v374_v6 = vld [vmem:[%s5251_s10 + $0x248] sm:$0xff] }
  0xf6   : > { %2635 = vmatmul.mubr.bf16.gmra.mrb[12].mxu0 %v611_v13  ;;  %2359 = vmatpush1.bf16.msra.mxu1 %v4435_v8  ;;  %v653_v8 = vpack.c.bf16 %v509_v63, %v493_v62  ;;  %v4482_v13 = vld [vmem:[#allocation5 + $0x4d4] ss:$8 sps:$4 sm:$0xff]   ;;  %v4509_v62 = vld [vmem:[#allocation5 + $0x224] ss:$8 sps:$4 sm:$0xff]  }
  0xf7   : > { %2698 = vmatpush1.bf16.msra.mxu0 %v4438_v9  ;;  %2360 = vmatprep.subr.bf16.mxu1 %v4443_v16  ;;  %v659_v9 = vpack.c.bf16 %v515_v1, %v499_v0  ;;  %v676_v16 = vpack.c.bf16 %v548_v11, %v532_v10  ;;  %v4512_v63 = vld [vmem:[#allocation5 + $0x524] ss:$8 sps:$4 sm:$0xff]   ;;  %v4507_v0 = vld [vmem:[#allocation5 + $0x220] ss:$8 sps:$4 sm:$0xff]   ;;  %v4513_v10 = vld [vmem:[#allocation5 + $0x230] ss:$8 sps:$4 sm:$0xff]  }
  0xf8   : > { %2699 = vmatprep.subr.bf16.mxu0 %v4446_v17  ;;  %2305 = vmatprep.mubr.bf16.mxu1 %v622_v19  ;;  %v4480_v17 = vld [vmem:[#allocation5 + $0x4d0] ss:$8 sps:$4 sm:$0xff]   ;;  %v541_v19 = vld [vmem:[%s5251_s10 + $0x780] sm:$0xff]  ;;  %v390_v7 = vld [vmem:[%s5251_s10 + $0x2c8] sm:$0xff] }
  0xf9   : > { %2644 = vmatprep.mubr.bf16.mxu0 %v628_v20  ;;  %v531_v20 = vld [vmem:[%s5251_s10 + $0x730] sm:$0xff]  ;;  %v4510_v1 = vld [vmem:[#allocation5 + $0x520] ss:$8 sps:$4 sm:$0xff]  }
  0xfa   : > { %2361 = vmatpush1.bf16.msra.mxu1 %v4441_v18  ;;  %v525_v18 = vld [vmem:[%s5251_s10 + $0x700] sm:$0xff] }
  0xfb   : > { %2700 = vmatpush1.bf16.msra.mxu0 %v4444_v21  ;;  %2362 = vmatprep.subr.bf16.mxu1 %v4449_v26  ;;  %v547_v21 = vld [vmem:[%s5251_s10 + $0x7b0] sm:$0xff]  ;;  %v304_v26 = vld [vmem:[%s5251_s10 + $0x18] sm:$0xff] }
  0xfc   : > { %2701 = vmatprep.subr.bf16.mxu0 %v4452_v27  ;;  %v320_v27 = vld [vmem:[%s5251_s10 + $0x98] sm:$0xff] }
  0xfd   : > { %2306 = vmatmul.mubr.bf16.gmra.mrb[16].mxu1 %v621_v32  ;;  %v4491_v32 = vld [vmem:[#allocation5 + $0x1f4] ss:$8 sps:$4 sm:$0xff]   ;;  %v560_v35 = vpack.c.bf16 %v320_v27, %v304_v26  ;;  %v406_v26 = vld [vmem:[%s5251_s10 + $0x348] sm:$0xff] }
  0xfe   : > { %2645 = vmatmul.mubr.bf16.gmra.mrb[16].mxu0 %v627_v33  ;;  %2363 = vmatpush1.bf16.msra.mxu1 %v4447_v28  ;;  %v669_v28 = vpack.c.bf16 %v541_v19, %v525_v18  ;;  %v4494_v33 = vld [vmem:[#allocation5 + $0x4f4] ss:$8 sps:$4 sm:$0xff]   ;;  %v4521_v18 = vld [vmem:[#allocation5 + $0x244] ss:$8 sps:$4 sm:$0xff]  }
  0xff   : > { %2702 = vmatpush1.bf16.msra.mxu0 %v4450_v29  ;;  %2364 = vmatprep.subr.bf16.mxu1 %v4455_v36  ;;  %v675_v29 = vpack.c.bf16 %v547_v21, %v531_v20  ;;  %v566_v36 = vpack.c.bf16 %v326_v31, %v310_v30  ;;  %v4524_v19 = vld [vmem:[#allocation5 + $0x544] ss:$8 sps:$4 sm:$0xff]   ;;  %v4519_v20 = vld [vmem:[#allocation5 + $0x240] ss:$8 sps:$4 sm:$0xff]   ;;  %v4525_v30 = vld [vmem:[#allocation5 + $0x250] ss:$8 sps:$4 sm:$0xff]  }
 0x100   : > { %2703 = vmatprep.subr.bf16.mxu0 %v4458_v37  ;;  %2315 = vmatprep.mubr.bf16.mxu1 %v638_v39  ;;  %v4492_v37 = vld [vmem:[#allocation5 + $0x4f0] ss:$8 sps:$4 sm:$0xff]   ;;  %v4522_v21 = vld [vmem:[#allocation5 + $0x540] ss:$8 sps:$4 sm:$0xff]  }
 0x101   : > { %2654 = vmatprep.mubr.bf16.mxu0 %v644_v40  ;;  %v319_v39 = vld [vmem:[%s5251_s10 + $0x90] sm:$0xff]  ;;  %v309_v40 = vld [vmem:[%s5251_s10 + $0x40] sm:$0xff]  ;;  %v422_v27 = vld [vmem:[%s5251_s10 + $0x3c8] sm:$0xff] }
 0x102   : > { %2365 = vmatpush1.bf16.msra.mxu1 %v4453_v38  ;;  %v303_v38 = vld [vmem:[%s5251_s10 + $0x10] sm:$0xff] }
 0x103   : > { %2704 = vmatpush1.bf16.msra.mxu0 %v4456_v41  ;;  %2366 = vmatprep.subr.bf16.mxu1 %v4461_v46  ;;  %v325_v41 = vld [vmem:[%s5251_s10 + $0xc0] sm:$0xff]  ;;  %v336_v46 = vld [vmem:[%s5251_s10 + $0x118] sm:$0xff] }
 0x104   : > { %2705 = vmatprep.subr.bf16.mxu0 %v4464_v47  ;;  %v352_v47 = vld [vmem:[%s5251_s10 + $0x198] sm:$0xff] }
 0x105   : > { %2316 = vmatmul.mubr.bf16.gmra.mrb[20].mxu1 %v637_v52  ;;  %v4503_v52 = vld [vmem:[#allocation5 + $0x214] ss:$8 sps:$4 sm:$0xff]   ;;  %v576_v55 = vpack.c.bf16 %v352_v47, %v336_v46  ;;  %v438_v46 = vld [vmem:[%s5251_s10 + $0x448] sm:$0xff] }
 0x106   : > { %2655 = vmatmul.mubr.bf16.gmra.mrb[20].mxu0 %v643_v53  ;;  %2367 = vmatpush1.bf16.msra.mxu1 %v4459_v48  ;;  %v559_v48 = vpack.c.bf16 %v319_v39, %v303_v38  ;;  %v4506_v53 = vld [vmem:[#allocation5 + $0x514] ss:$8 sps:$4 sm:$0xff]   ;;  %v4533_v38 = vld [vmem:[#allocation5 + $0x264] ss:$8 sps:$4 sm:$0xff]  }
 0x107   : > { %2706 = vmatpush1.bf16.msra.mxu0 %v4462_v49  ;;  %2368 = vmatprep.subr.bf16.mxu1 %v4467_v56  ;;  %v565_v49 = vpack.c.bf16 %v325_v41, %v309_v40  ;;  %v582_v56 = vpack.c.bf16 %v358_v51, %v342_v50  ;;  %v4536_v39 = vld [vmem:[#allocation5 + $0x564] ss:$8 sps:$4 sm:$0xff]   ;;  %v4531_v40 = vld [vmem:[#allocation5 + $0x260] ss:$8 sps:$4 sm:$0xff]   ;;  %v4537_v50 = vld [vmem:[#allocation5 + $0x270] ss:$8 sps:$4 sm:$0xff]  }
 0x108   : > { %2707 = vmatprep.subr.bf16.mxu0 %v4470_v57  ;;  %2325 = vmatprep.mubr.bf16.mxu1 %v654_v59  ;;  %v4504_v57 = vld [vmem:[#allocation5 + $0x510] ss:$8 sps:$4 sm:$0xff]   ;;  %v4534_v41 = vld [vmem:[#allocation5 + $0x560] ss:$8 sps:$4 sm:$0xff]  }
 0x109   : > { %2664 = vmatprep.mubr.bf16.mxu0 %v660_v60  ;;  %v351_v59 = vld [vmem:[%s5251_s10 + $0x190] sm:$0xff]  ;;  %v341_v60 = vld [vmem:[%s5251_s10 + $0x140] sm:$0xff]  ;;  %v454_v47 = vld [vmem:[%s5251_s10 + $0x4c8] sm:$0xff] }
 0x10a   : > { %2369 = vmatpush1.bf16.msra.mxu1 %v4465_v58  ;;  %v335_v58 = vld [vmem:[%s5251_s10 + $0x110] sm:$0xff] }
 0x10b   : > { %2708 = vmatpush1.bf16.msra.mxu0 %v4468_v61  ;;  %2370 = vmatprep.subr.bf16.mxu1 %v4473_v2  ;;  %v357_v61 = vld [vmem:[%s5251_s10 + $0x1c0] sm:$0xff]  ;;  %v368_v2 = vld [vmem:[%s5251_s10 + $0x218] sm:$0xff] }
 0x10c   : > { %2709 = vmatprep.subr.bf16.mxu0 %v4476_v3  ;;  %v384_v3 = vld [vmem:[%s5251_s10 + $0x298] sm:$0xff] }
 0x10d   : > { %2326 = vmatmul.mubr.bf16.gmra.mrb[24].mxu1 %v653_v8  ;;  %v4515_v8 = vld [vmem:[#allocation5 + $0x234] ss:$8 sps:$4 sm:$0xff]   ;;  %v592_v11 = vpack.c.bf16 %v384_v3, %v368_v2  ;;  %v470_v2 = vld [vmem:[%s5251_s10 + $0x548] sm:$0xff] }
 0x10e   : > { %2665 = vmatmul.mubr.bf16.gmra.mrb[24].mxu0 %v659_v9  ;;  %2371 = vmatpush1.bf16.msra.mxu1 %v4471_v4  ;;  %v575_v4 = vpack.c.bf16 %v351_v59, %v335_v58  ;;  %v4518_v9 = vld [vmem:[#allocation5 + $0x534] ss:$8 sps:$4 sm:$0xff]   ;;  %v4545_v58 = vld [vmem:[#allocation5 + $0x284] ss:$8 sps:$4 sm:$0xff]  }
 0x10f   : > { %2710 = vmatpush1.bf16.msra.mxu0 %v4474_v5  ;;  %2372 = vmatprep.subr.bf16.mxu1 %v4479_v12  ;;  %v581_v5 = vpack.c.bf16 %v357_v61, %v341_v60  ;;  %v598_v12 = vpack.c.bf16 %v390_v7, %v374_v6  ;;  %v4548_v59 = vld [vmem:[#allocation5 + $0x584] ss:$8 sps:$4 sm:$0xff]   ;;  %v4543_v60 = vld [vmem:[#allocation5 + $0x280] ss:$8 sps:$4 sm:$0xff]   ;;  %v4549_v6 = vld [vmem:[#allocation5 + $0x290] ss:$8 sps:$4 sm:$0xff]  }
 0x110   : > { %2711 = vmatprep.subr.bf16.mxu0 %v4482_v13  ;;  %2335 = vmatprep.mubr.bf16.mxu1 %v670_v15  ;;  %v4516_v13 = vld [vmem:[#allocation5 + $0x530] ss:$8 sps:$4 sm:$0xff]   ;;  %v4546_v61 = vld [vmem:[#allocation5 + $0x580] ss:$8 sps:$4 sm:$0xff]  }
 0x111   : > { %2674 = vmatprep.mubr.bf16.mxu0 %v676_v16  ;;  %v383_v15 = vld [vmem:[%s5251_s10 + $0x290] sm:$0xff]  ;;  %v373_v16 = vld [vmem:[%s5251_s10 + $0x240] sm:$0xff]  ;;  %v486_v3 = vld [vmem:[%s5251_s10 + $0x5c8] sm:$0xff] }
 0x112   : > { %2373 = vmatpush1.bf16.msra.mxu1 %v4477_v14  ;;  %v367_v14 = vld [vmem:[%s5251_s10 + $0x210] sm:$0xff] }
 0x113   : > { %2712 = vmatpush1.bf16.msra.mxu0 %v4480_v17  ;;  %2374 = vmatprep.subr.bf16.mxu1 %v4485_v22  ;;  %v389_v17 = vld [vmem:[%s5251_s10 + $0x2c0] sm:$0xff]  ;;  %v400_v22 = vld [vmem:[%s5251_s10 + $0x318] sm:$0xff] }
 0x114   : > { %2713 = vmatprep.subr.bf16.mxu0 %v4488_v23  ;;  %v416_v23 = vld [vmem:[%s5251_s10 + $0x398] sm:$0xff] }
 0x115   : > { %2336 = vmatmul.mubr.bf16.gmra.mrb[28].mxu1 %v669_v28  ;;  %v4527_v28 = vld [vmem:[#allocation5 + $0x254] ss:$8 sps:$4 sm:$0xff]   ;;  %v608_v31 = vpack.c.bf16 %v416_v23, %v400_v22  ;;  %v502_v22 = vld [vmem:[%s5251_s10 + $0x648] sm:$0xff] }
 0x116   : > { %2675 = vmatmul.mubr.bf16.gmra.mrb[28].mxu0 %v675_v29  ;;  %2375 = vmatpush1.bf16.msra.mxu1 %v4483_v24  ;;  %v591_v24 = vpack.c.bf16 %v383_v15, %v367_v14  ;;  %v4530_v29 = vld [vmem:[#allocation5 + $0x554] ss:$8 sps:$4 sm:$0xff]   ;;  %v4557_v14 = vld [vmem:[#allocation5 + $0x2a4] ss:$8 sps:$4 sm:$0xff]  }
 0x117   : > { %2714 = vmatpush1.bf16.msra.mxu0 %v4486_v25  ;;  %2376 = vmatprep.subr.bf16.mxu1 %v4491_v32  ;;  %v597_v25 = vpack.c.bf16 %v389_v17, %v373_v16  ;;  %v614_v32 = vpack.c.bf16 %v422_v27, %v406_v26  ;;  %v4560_v15 = vld [vmem:[#allocation5 + $0x5a4] ss:$8 sps:$4 sm:$0xff]   ;;  %v4555_v16 = vld [vmem:[#allocation5 + $0x2a0] ss:$8 sps:$4 sm:$0xff]   ;;  %v4561_v26 = vld [vmem:[#allocation5 + $0x2b0] ss:$8 sps:$4 sm:$0xff]  }
 0x118   : > { %2715 = vmatprep.subr.bf16.mxu0 %v4494_v33  ;;  %2378 = vmatprep.mubr.bf16.mxu1 %v560_v35  ;;  %v4528_v33 = vld [vmem:[#allocation5 + $0x550] ss:$8 sps:$4 sm:$0xff]   ;;  %v4558_v17 = vld [vmem:[#allocation5 + $0x5a0] ss:$8 sps:$4 sm:$0xff]  }
 0x119   : > { %2717 = vmatprep.mubr.bf16.mxu0 %v566_v36  ;;  %v415_v35 = vld [vmem:[%s5251_s10 + $0x390] sm:$0xff]  ;;  %v405_v36 = vld [vmem:[%s5251_s10 + $0x340] sm:$0xff]  ;;  %v518_v23 = vld [vmem:[%s5251_s10 + $0x6c8] sm:$0xff] }
 0x11a   : > { %2377 = vmatpush1.bf16.msra.mxu1 %v4489_v34  ;;  %v399_v34 = vld [vmem:[%s5251_s10 + $0x310] sm:$0xff] }
 0x11b   : > { %2716 = vmatpush1.bf16.msra.mxu0 %v4492_v37  ;;  %2459 = vmatprep.subr.bf16.mxu1 %v4497_v42  ;;  %v421_v37 = vld [vmem:[%s5251_s10 + $0x3c0] sm:$0xff]  ;;  %v432_v42 = vld [vmem:[%s5251_s10 + $0x418] sm:$0xff] }
 0x11c   : > { %2798 = vmatprep.subr.bf16.mxu0 %v4500_v43  ;;  %v448_v43 = vld [vmem:[%s5251_s10 + $0x498] sm:$0xff] }
 0x11d   : > { %2379 = vmatmul.mubr.bf16.vlgmr.msra.gmra.mrb[0].mxu1 %v559_v48  ;;  %v4539_v48 = vld [vmem:[#allocation5 + $0x274] ss:$8 sps:$4 sm:$0xff]   ;;  %v624_v51 = vpack.c.bf16 %v448_v43, %v432_v42  ;;  %v4567_v42 = vld [vmem:[#allocation5 + $0x2c0] ss:$8 sps:$4 sm:$0xff]  }
 0x11e   : > { %2718 = vmatmul.mubr.bf16.vlgmr.msra.gmra.mrb[0].mxu0 %v565_v49  ;;  %2460 = vmatpush1.bf16.msra.mxu1 %v4495_v44  ;;  %v607_v44 = vpack.c.bf16 %v415_v35, %v399_v34  ;;  %v4542_v49 = vld [vmem:[#allocation5 + $0x574] ss:$8 sps:$4 sm:$0xff]   ;;  %v517_v34 = vld [vmem:[%s5251_s10 + $0x6c0] sm:$0xff] }
 0x11f   : > { %2799 = vmatpush1.bf16.msra.mxu0 %v4498_v45  ;;  %2461 = vmatprep.subr.bf16.mxu1 %v4503_v52  ;;  %v613_v45 = vpack.c.bf16 %v421_v37, %v405_v36  ;;  %v630_v52 = vpack.c.bf16 %v454_v47, %v438_v46  ;;  %v4572_v35 = vld [vmem:[#allocation5 + $0x5c4] ss:$8 sps:$4 sm:$0xff]   ;;  %v528_v36 = vld [vmem:[%s5251_s10 + $0x718] sm:$0xff]  ;;  %v4570_v43 = vld [vmem:[#allocation5 + $0x5c0] ss:$8 sps:$4 sm:$0xff]  }
 0x120   : > { %2800 = vmatprep.subr.bf16.mxu0 %v4506_v53  ;;  %2388 = vmatprep.mubr.bf16.mxu1 %v576_v55  ;;  %v4540_v53 = vld [vmem:[#allocation5 + $0x570] ss:$8 sps:$4 sm:$0xff]  }
 0x121   : > { %2727 = vmatprep.mubr.bf16.mxu0 %v582_v56  ;;  %v447_v55 = vld [vmem:[%s5251_s10 + $0x490] sm:$0xff]  ;;  %v437_v56 = vld [vmem:[%s5251_s10 + $0x440] sm:$0xff]  ;;  %v544_v37 = vld [vmem:[%s5251_s10 + $0x798] sm:$0xff] }
 0x122   : > { %2462 = vmatpush1.bf16.msra.mxu1 %v4501_v54  ;;  %v431_v54 = vld [vmem:[%s5251_s10 + $0x410] sm:$0xff] }
 0x123   : > { %2801 = vmatpush1.bf16.msra.mxu0 %v4504_v57  ;;  %2463 = vmatprep.subr.bf16.mxu1 %v4509_v62  ;;  %v453_v57 = vld [vmem:[%s5251_s10 + $0x4c0] sm:$0xff]  ;;  %v464_v62 = vld [vmem:[%s5251_s10 + $0x518] sm:$0xff] }
 0x124   : > { %2802 = vmatprep.subr.bf16.mxu0 %v4512_v63  ;;  %v480_v63 = vld [vmem:[%s5251_s10 + $0x598] sm:$0xff] }
 0x125   : > { %2389 = vmatmul.mubr.bf16.gmra.mrb[4].mxu1 %v575_v4  ;;  %v4551_v4 = vld [vmem:[#allocation5 + $0x294] ss:$8 sps:$4 sm:$0xff]   ;;  %v640_v7 = vpack.c.bf16 %v480_v63, %v464_v62  ;;  %v4573_v46 = vld [vmem:[#allocation5 + $0x2d0] ss:$8 sps:$4 sm:$0xff]  }
 0x126   : > { %2728 = vmatmul.mubr.bf16.gmra.mrb[4].mxu0 %v581_v5  ;;  %2464 = vmatpush1.bf16.msra.mxu1 %v4507_v0  ;;  %v623_v0 = vpack.c.bf16 %v447_v55, %v431_v54  ;;  %v4554_v5 = vld [vmem:[#allocation5 + $0x594] ss:$8 sps:$4 sm:$0xff]   ;;  %v4576_v47 = vld [vmem:[#allocation5 + $0x5d0] ss:$8 sps:$4 sm:$0xff]   ;;  %v4581_v54 = vld [vmem:[#allocation5 + $0x2e4] ss:$8 sps:$4 sm:$0xff]  }
 0x127   : > { %2803 = vmatpush1.bf16.msra.mxu0 %v4510_v1  ;;  %2465 = vmatprep.subr.bf16.mxu1 %v4515_v8  ;;  %v629_v1 = vpack.c.bf16 %v453_v57, %v437_v56  ;;  %v646_v8 = vpack.c.bf16 %v486_v3, %v470_v2  ;;  %v4584_v55 = vld [vmem:[#allocation5 + $0x5e4] ss:$8 sps:$4 sm:$0xff]   ;;  %v4579_v56 = vld [vmem:[#allocation5 + $0x2e0] ss:$8 sps:$4 sm:$0xff]   ;;  %v312_v62 = vld [vmem:[%s5251_s10 + $0x58] sm:$0xff] }
 0x128   : > { %2804 = vmatprep.subr.bf16.mxu0 %v4518_v9  ;;  %2398 = vmatprep.mubr.bf16.mxu1 %v592_v11  ;;  %v4552_v9 = vld [vmem:[#allocation5 + $0x590] ss:$8 sps:$4 sm:$0xff]   ;;  %v4582_v57 = vld [vmem:[#allocation5 + $0x5e0] ss:$8 sps:$4 sm:$0xff]  }
 0x129   : > { %2737 = vmatprep.mubr.bf16.mxu0 %v598_v12  ;;  %v479_v11 = vld [vmem:[%s5251_s10 + $0x590] sm:$0xff]  ;;  %v469_v12 = vld [vmem:[%s5251_s10 + $0x540] sm:$0xff]  ;;  %v328_v63 = vld [vmem:[%s5251_s10 + $0xd8] sm:$0xff] }
 0x12a   : > { %2466 = vmatpush1.bf16.msra.mxu1 %v4513_v10  ;;  %v463_v10 = vld [vmem:[%s5251_s10 + $0x510] sm:$0xff] }
 0x12b   : > { %2805 = vmatpush1.bf16.msra.mxu0 %v4516_v13  ;;  %2467 = vmatprep.subr.bf16.mxu1 %v4521_v18  ;;  %v485_v13 = vld [vmem:[%s5251_s10 + $0x5c0] sm:$0xff]  ;;  %v496_v18 = vld [vmem:[%s5251_s10 + $0x618] sm:$0xff] }
 0x12c   : > { %2806 = vmatprep.subr.bf16.mxu0 %v4524_v19  ;;  %v512_v19 = vld [vmem:[%s5251_s10 + $0x698] sm:$0xff] }
 0x12d   : > { %2399 = vmatmul.mubr.bf16.gmra.mrb[8].mxu1 %v591_v24  ;;  %v4563_v24 = vld [vmem:[#allocation5 + $0x2b4] ss:$8 sps:$4 sm:$0xff]   ;;  %v656_v27 = vpack.c.bf16 %v512_v19, %v496_v18  ;;  %v4585_v2 = vld [vmem:[#allocation5 + $0x2f0] ss:$8 sps:$4 sm:$0xff]  }
 0x12e   : > { %2738 = vmatmul.mubr.bf16.gmra.mrb[8].mxu0 %v597_v25  ;;  %2468 = vmatpush1.bf16.msra.mxu1 %v4519_v20  ;;  %v639_v20 = vpack.c.bf16 %v479_v11, %v463_v10  ;;  %v4566_v25 = vld [vmem:[#allocation5 + $0x5b4] ss:$8 sps:$4 sm:$0xff]   ;;  %v4588_v3 = vld [vmem:[#allocation5 + $0x5f0] ss:$8 sps:$4 sm:$0xff]   ;;  %v4593_v10 = vld [vmem:[#allocation5 + $0x604] ss:$8 sps:$4 sm:$0xff]  }
 0x12f   : > { %2807 = vmatpush1.bf16.msra.mxu0 %v4522_v21  ;;  %2469 = vmatprep.subr.bf16.mxu1 %v4527_v28  ;;  %v645_v21 = vpack.c.bf16 %v485_v13, %v469_v12  ;;  %v662_v28 = vpack.c.bf16 %v518_v23, %v502_v22  ;;  %v338_v11 = vld [vmem:[%s5251_s10 + $0x128] sm:$0xff]  ;;  %v344_v13 = vld [vmem:[%s5251_s10 + $0x158] sm:$0xff]  ;;  %v337_v22 = vld [vmem:[%s5251_s10 + $0x120] sm:$0xff] }
 0x130   : > { %2808 = vmatprep.subr.bf16.mxu0 %v4530_v29  ;;  %2408 = vmatprep.mubr.bf16.mxu1 %v608_v31  ;;  %v4564_v29 = vld [vmem:[#allocation5 + $0x5b0] ss:$8 sps:$4 sm:$0xff]   ;;  %v354_v12 = vld [vmem:[%s5251_s10 + $0x1a8] sm:$0xff]  ;;  %v4596_v19 = vld [vmem:[#allocation5 + $0x614] ss:$8 sps:$4 sm:$0xff]  }
 0x131   : > { %2747 = vmatprep.mubr.bf16.mxu0 %v614_v32  ;;  %v511_v31 = vld [vmem:[%s5251_s10 + $0x690] sm:$0xff]  ;;  %v4569_v32 = vld [vmem:[#allocation5 + $0x2c4] ss:$8 sps:$4 sm:$0xff]   ;;  %v578_v18 = vpack.c.bf16 %v354_v12, %v338_v11 }
 0x132   : > { %2470 = vmatpush1.bf16.msra.mxu1 %v4525_v30  ;;  %v495_v30 = vld [vmem:[%s5251_s10 + $0x610] sm:$0xff]  ;;  %v353_v23 = vld [vmem:[%s5251_s10 + $0x1a0] sm:$0xff] }
 0x133   : > { %2809 = vmatpush1.bf16.msra.mxu0 %v4528_v33  ;;  %2471 = vmatprep.subr.bf16.mxu1 %v4533_v38  ;;  %v501_v33 = vld [vmem:[%s5251_s10 + $0x640] sm:$0xff]  ;;  %v655_v38 = vpack.c.bf16 %v511_v31, %v495_v30  ;;  %v376_v31 = vld [vmem:[%s5251_s10 + $0x258] sm:$0xff] }
 0x134   : > { %2810 = vmatprep.subr.bf16.mxu0 %v4536_v39  ;;  %v661_v39 = vpack.c.bf16 %v517_v34, %v501_v33  ;;  %v5413_v30 = vld [vmem:[#allocation5 + $0x704] ss:$8 sps:$4 sm:$0xff]   ;;  %v577_v33 = vpack.c.bf16 %v353_v23, %v337_v22  ;;  %v4614_v12 = vld [vmem:[#allocation5 + $0x674] ss:$8 sps:$4 sm:$0xff]  }
 0x135   : > { %2409 = vmatmul.mubr.bf16.gmra.mrb[12].mxu1 %v607_v44  ;;  %v4575_v44 = vld [vmem:[#allocation5 + $0x2d4] ss:$8 sps:$4 sm:$0xff]   ;;  %v482_v23 = vld [vmem:[%s5251_s10 + $0x5a8] sm:$0xff] }
 0x136   : > { %2748 = vmatmul.mubr.bf16.gmra.mrb[12].mxu0 %v613_v45  ;;  %2472 = vmatpush1.bf16.msra.mxu1 %v4531_v40  ;;  %v534_v40 = vld [vmem:[%s5251_s10 + $0x748] sm:$0xff]  ;;  %v4578_v45 = vld [vmem:[#allocation5 + $0x5d4] ss:$8 sps:$4 sm:$0xff]  }
 0x137   : > { %2811 = vmatpush1.bf16.msra.mxu0 %v4534_v41  ;;  %2473 = vmatprep.subr.bf16.mxu1 %v4539_v48  ;;  %v550_v41 = vld [vmem:[%s5251_s10 + $0x7c8] sm:$0xff]  ;;  %v672_v48 = vpack.c.bf16 %v544_v37, %v528_v36  ;;  %v5463_v22 = vld [vmem:[#allocation5 + $0x754] ss:$8 sps:$4 sm:$0xff]  }
 0x138   : > { %2812 = vmatprep.subr.bf16.mxu0 %v4542_v49  ;;  %2418 = vmatprep.mubr.bf16.mxu1 %v624_v51  ;;  %v678_v49 = vpack.c.bf16 %v550_v41, %v534_v40  ;;  %v543_v51 = vld [vmem:[%s5251_s10 + $0x790] sm:$0xff]  ;;  %v4597_v36 = vld [vmem:[#allocation5 + $0x620] ss:$8 sps:$4 sm:$0xff]  }
 0x139   : > { %2757 = vmatprep.mubr.bf16.mxu0 %v630_v52  ;;  %v533_v52 = vld [vmem:[%s5251_s10 + $0x740] sm:$0xff]  ;;  %v4600_v40 = vld [vmem:[#allocation5 + $0x630] ss:$8 sps:$4 sm:$0xff]  }
 0x13a   : > { %2474 = vmatpush1.bf16.msra.mxu1 %v4537_v50  ;;  %v527_v50 = vld [vmem:[%s5251_s10 + $0x710] sm:$0xff]  ;;  %v369_v41 = vld [vmem:[%s5251_s10 + $0x220] sm:$0xff] }
 0x13b   : > { %2813 = vmatpush1.bf16.msra.mxu0 %v4540_v53  ;;  %2475 = vmatprep.subr.bf16.mxu1 %v4545_v58  ;;  %v549_v53 = vld [vmem:[%s5251_s10 + $0x7c0] sm:$0xff]  ;;  %v306_v58 = vld [vmem:[%s5251_s10 + $0x28] sm:$0xff] }
 0x13c   : > { %2814 = vmatprep.subr.bf16.mxu0 %v4548_v59  ;;  %v671_v59 = vpack.c.bf16 %v543_v51, %v527_v50  ;;  %v5431_v50 = vld [vmem:[#allocation5 + $0x724] ss:$8 sps:$4 sm:$0xff]   ;;  %v424_v51 = vld [vmem:[%s5251_s10 + $0x3d8] sm:$0xff] }
 0x13d   : > { %2419 = vmatmul.mubr.bf16.gmra.mrb[16].mxu1 %v623_v0  ;;  %v4587_v0 = vld [vmem:[#allocation5 + $0x2f4] ss:$8 sps:$4 sm:$0xff]  }
 0x13e   : > { %2758 = vmatmul.mubr.bf16.gmra.mrb[16].mxu0 %v629_v1  ;;  %2476 = vmatpush1.bf16.msra.mxu1 %v4543_v60  ;;  %v677_v60 = vpack.c.bf16 %v549_v53, %v533_v52  ;;  %v4590_v1 = vld [vmem:[#allocation5 + $0x5f4] ss:$8 sps:$4 sm:$0xff]   ;;  %v5435_v52 = vld [vmem:[#allocation5 + $0x720] ss:$8 sps:$4 sm:$0xff]  }
 0x13f   : > { %2815 = vmatpush1.bf16.msra.mxu0 %v4546_v61  ;;  %2477 = vmatprep.subr.bf16.mxu1 %v4551_v4  ;;  %v322_v61 = vld [vmem:[%s5251_s10 + $0xa8] sm:$0xff] }
 0x140   : > { %2816 = vmatprep.subr.bf16.mxu0 %v4554_v5  ;;  %2428 = vmatprep.mubr.bf16.mxu1 %v640_v7  ;;  %v562_v4 = vpack.c.bf16 %v322_v61, %v306_v58  ;;  %v568_v5 = vpack.c.bf16 %v328_v63, %v312_v62  ;;  %v321_v7 = vld [vmem:[%s5251_s10 + $0xa0] sm:$0xff]  ;;  %v407_v62 = vld [vmem:[%s5251_s10 + $0x350] sm:$0xff] }
 0x141   : > { %2767 = vmatprep.mubr.bf16.mxu0 %v646_v8  ;;  %v311_v8 = vld [vmem:[%s5251_s10 + $0x50] sm:$0xff]  ;;  %v417_v61 = vld [vmem:[%s5251_s10 + $0x3a0] sm:$0xff] }
 0x142   : > { %2478 = vmatpush1.bf16.msra.mxu1 %v4549_v6  ;;  %v305_v6 = vld [vmem:[%s5251_s10 + $0x20] sm:$0xff]  ;;  %v423_v63 = vld [vmem:[%s5251_s10 + $0x3d0] sm:$0xff] }
 0x143   : > { %2817 = vmatpush1.bf16.msra.mxu0 %v4552_v9  ;;  %2479 = vmatprep.subr.bf16.mxu1 %v4557_v14  ;;  %v327_v9 = vld [vmem:[%s5251_s10 + $0xd0] sm:$0xff]  ;;  %v360_v14 = vld [vmem:[%s5251_s10 + $0x1d8] sm:$0xff] }
 0x144   : > { %2818 = vmatprep.subr.bf16.mxu0 %v4560_v15  ;;  %v561_v15 = vpack.c.bf16 %v321_v7, %v305_v6  ;;  %v440_v6 = vld [vmem:[%s5251_s10 + $0x458] sm:$0xff] }
 0x145   : > { %2429 = vmatmul.mubr.bf16.gmra.mrb[20].mxu1 %v639_v20  ;;  %v584_v20 = vpack.c.bf16 %v360_v14, %v344_v13  ;;  %v456_v7 = vld [vmem:[%s5251_s10 + $0x4d8] sm:$0xff] }
 0x146   : > { %2768 = vmatmul.mubr.bf16.gmra.mrb[20].mxu0 %v645_v21  ;;  %2480 = vmatpush1.bf16.msra.mxu1 %v4555_v16  ;;  %v567_v16 = vpack.c.bf16 %v327_v9, %v311_v8  ;;  %v4594_v21 = vld [vmem:[#allocation5 + $0x610] ss:$8 sps:$4 sm:$0xff]   ;;  %v615_v9 = vpack.c.bf16 %v423_v63, %v407_v62  ;;  %v632_v13 = vpack.c.bf16 %v456_v7, %v440_v6  ;;  %v546_v6 = vld [vmem:[%s5251_s10 + $0x7a8] sm:$0xff] }
 0x147   : > { %2819 = vmatpush1.bf16.msra.mxu0 %v4558_v17  ;;  %2481 = vmatprep.subr.bf16.mxu1 %v4563_v24  ;;  %v4591_v17 = vld [vmem:[#allocation5 + $0x600] ss:$8 sps:$4 sm:$0xff]   ;;  %v343_v24 = vld [vmem:[%s5251_s10 + $0x150] sm:$0xff]  ;;  %v536_v7 = vld [vmem:[%s5251_s10 + $0x758] sm:$0xff] }
 0x148   : > { %2820 = vmatprep.subr.bf16.mxu0 %v4566_v25  ;;  %2438 = vmatprep.mubr.bf16.mxu1 %v656_v27  ;;  %v359_v25 = vld [vmem:[%s5251_s10 + $0x1d0] sm:$0xff]  ;;  %v370_v27 = vld [vmem:[%s5251_s10 + $0x228] sm:$0xff] }
 0x149   : > { %2777 = vmatprep.mubr.bf16.mxu0 %v662_v28  ;;  %v386_v28 = vld [vmem:[%s5251_s10 + $0x2a8] sm:$0xff]  ;;  %v583_v34 = vpack.c.bf16 %v359_v25, %v343_v24  ;;  %v4612_v14 = vld [vmem:[#allocation5 + $0x670] ss:$8 sps:$4 sm:$0xff]  }
 0x14a   : > { %2482 = vmatpush1.bf16.msra.mxu1 %v4561_v26  ;;  %v4599_v26 = vld [vmem:[#allocation5 + $0x624] ss:$8 sps:$4 sm:$0xff]   ;;  %v594_v37 = vpack.c.bf16 %v386_v28, %v370_v27  ;;  %v472_v24 = vld [vmem:[%s5251_s10 + $0x558] sm:$0xff]  ;;  %v519_v63 = vld [vmem:[%s5251_s10 + $0x6d0] sm:$0xff] }
 0x14b   : > { %2821 = vmatpush1.bf16.msra.mxu0 %v4564_v29  ;;  %2483 = vmatprep.subr.bf16.mxu1 %v4569_v32  ;;  %v5411_v29 = vld [vmem:[#allocation5 + $0x700] ss:$8 sps:$4 sm:$0xff]   ;;  %v392_v32 = vld [vmem:[%s5251_s10 + $0x2d8] sm:$0xff] }
 0x14c   : > { %2822 = vmatprep.subr.bf16.mxu0 %v4572_v35  ;;  %v5418_v35 = vld [vmem:[#allocation5 + $0x714] ss:$8 sps:$4 sm:$0xff]   ;;  %v5493_v62 = vld [vmem:[#allocation5 + $0x770] ss:$8 sps:$4 sm:$0xff]  }
 0x14d   : > { %2439 = vmatmul.mubr.bf16.gmra.mrb[24].mxu1 %v655_v38  ;;  %v4602_v38 = vld [vmem:[#allocation5 + $0x634] ss:$8 sps:$4 sm:$0xff]  }
 0x14e   : > { %2778 = vmatmul.mubr.bf16.gmra.mrb[24].mxu0 %v661_v39  ;;  %2484 = vmatpush1.bf16.msra.mxu1 %v4567_v42  ;;  %v600_v39 = vpack.c.bf16 %v392_v32, %v376_v31  ;;  %v385_v42 = vld [vmem:[%s5251_s10 + $0x2a0] sm:$0xff]  ;;  %v488_v25 = vld [vmem:[%s5251_s10 + $0x5d8] sm:$0xff] }
 0x14f   : > { %2823 = vmatpush1.bf16.msra.mxu0 %v4570_v43  ;;  %2485 = vmatprep.subr.bf16.mxu1 %v4575_v44  ;;  %v375_v43 = vld [vmem:[%s5251_s10 + $0x250] sm:$0xff]  ;;  %v593_v53 = vpack.c.bf16 %v385_v42, %v369_v41  ;;  %v4615_v31 = vld [vmem:[#allocation5 + $0x680] ss:$8 sps:$4 sm:$0xff]  }
 0x150   : > { %2824 = vmatprep.subr.bf16.mxu0 %v4578_v45  ;;  %2448 = vmatprep.mubr.bf16.mxu1 %v672_v48  ;;  %v391_v44 = vld [vmem:[%s5251_s10 + $0x2d0] sm:$0xff]  ;;  %v418_v48 = vld [vmem:[%s5251_s10 + $0x3a8] sm:$0xff] }
 0x151   : > { %2787 = vmatprep.mubr.bf16.mxu0 %v678_v49  ;;  %v5426_v45 = vld [vmem:[#allocation5 + $0x710] ss:$8 sps:$4 sm:$0xff]   ;;  %v5479_v42 = vld [vmem:[#allocation5 + $0x760] ss:$8 sps:$4 sm:$0xff]  }
 0x152   : > { %2486 = vmatpush1.bf16.msra.mxu1 %v4573_v46  ;;  %v4605_v46 = vld [vmem:[#allocation5 + $0x644] ss:$8 sps:$4 sm:$0xff]   ;;  %v408_v49 = vld [vmem:[%s5251_s10 + $0x358] sm:$0xff]  ;;  %v487_v41 = vld [vmem:[%s5251_s10 + $0x5d0] sm:$0xff] }
 0x153   : > { %2825 = vmatpush1.bf16.msra.mxu0 %v4576_v47  ;;  %2487 = vmatprep.subr.bf16.mxu1 %v4581_v54  ;;  %v402_v47 = vld [vmem:[%s5251_s10 + $0x328] sm:$0xff]  ;;  %v599_v54 = vpack.c.bf16 %v391_v44, %v375_v43  ;;  %v616_v58 = vpack.c.bf16 %v424_v51, %v408_v49  ;;  %v520_v49 = vld [vmem:[%s5251_s10 + $0x6d8] sm:$0xff] }
 0x154   : > { %2826 = vmatprep.subr.bf16.mxu0 %v4584_v55  ;;  %v4603_v55 = vld [vmem:[#allocation5 + $0x640] ss:$8 sps:$4 sm:$0xff]   ;;  %v4629_v43 = vld [vmem:[#allocation5 + $0x6a4] ss:$8 sps:$4 sm:$0xff]  }
 0x155   : > { %2449 = vmatmul.mubr.bf16.gmra.mrb[28].mxu1 %v671_v59  ;;  %v4606_v59 = vld [vmem:[#allocation5 + $0x650] ss:$8 sps:$4 sm:$0xff]   ;;  %v498_v44 = vld [vmem:[%s5251_s10 + $0x628] sm:$0xff] }
 0x156   : > { %2788 = vmatmul.mubr.bf16.gmra.mrb[28].mxu0 %v677_v60  ;;  %2488 = vmatpush1.bf16.msra.mxu1 %v4579_v56  ;;  %v610_v56 = vpack.c.bf16 %v418_v48, %v402_v47  ;;  %v401_v60 = vld [vmem:[%s5251_s10 + $0x320] sm:$0xff]  ;;  %v514_v47 = vld [vmem:[%s5251_s10 + $0x6a8] sm:$0xff]  ;;  %v504_v48 = vld [vmem:[%s5251_s10 + $0x658] sm:$0xff] }
 0x157   : > { %2827 = vmatpush1.bf16.msra.mxu0 %v4582_v57  ;;  %2489 = vmatprep.subr.bf16.mxu1 %v4587_v0  ;;  %v4608_v57 = vld [vmem:[#allocation5 + $0x654] ss:$8 sps:$4 sm:$0xff]   ;;  %v609_v8 = vpack.c.bf16 %v417_v61, %v401_v60  ;;  %v513_v60 = vld [vmem:[%s5251_s10 + $0x6a0] sm:$0xff] }
 0x158   : > { %2828 = vmatprep.subr.bf16.mxu0 %v4590_v1  ;;  %2491 = vmatprep.mubr.bf16.mxu1 %v562_v4  ;;  %v5443_v0 = vld [vmem:[#allocation5 + $0x734] ss:$8 sps:$4 sm:$0xff]   ;;  %v4611_v1 = vld [vmem:[#allocation5 + $0x664] ss:$8 sps:$4 sm:$0xff]  }
 0x159   : > { %2830 = vmatprep.mubr.bf16.mxu0 %v568_v5  ;;  %v450_v4 = vld [vmem:[%s5251_s10 + $0x4a8] sm:$0xff]  ;;  %v503_v61 = vld [vmem:[%s5251_s10 + $0x650] sm:$0xff] }
 0x15a   : > { %2490 = vmatpush1.bf16.msra.mxu1 %v4585_v2  ;;  %v434_v2 = vld [vmem:[%s5251_s10 + $0x428] sm:$0xff] }
 0x15b   : > { %2829 = vmatpush1.bf16.msra.mxu0 %v4588_v3  ;;  %3921 = vmatprep.subr.bf16.mxu1 %v5413_v30  ;;  %v5446_v3 = vld [vmem:[#allocation5 + $0x730] ss:$8 sps:$4 sm:$0xff]   ;;  %v5449_v5 = vld [vmem:[#allocation5 + $0x744] ss:$8 sps:$4 sm:$0xff]   ;;  %v626_v11 = vpack.c.bf16 %v450_v4, %v434_v2 }
 0x15c   : > { %2911 = vmatprep.subr.bf16.mxu0 %v4593_v10  ;;  %v4609_v10 = vld [vmem:[#allocation5 + $0x660] ss:$8 sps:$4 sm:$0xff]   ;;  %v4641_v2 = vld [vmem:[#allocation5 + $0x6c4] ss:$8 sps:$4 sm:$0xff]  }
 0x15d   : > { %2492 = vmatmul.mubr.bf16.vlgmr.msra.gmra.mrb[0].mxu1 %v561_v15  ;;  %v433_v15 = vld [vmem:[%s5251_s10 + $0x420] sm:$0xff]  ;;  %v530_v4 = vld [vmem:[%s5251_s10 + $0x728] sm:$0xff] }
 0x15e   : > { %2831 = vmatmul.mubr.bf16.vlgmr.msra.gmra.mrb[0].mxu0 %v567_v16  ;;  %2501 = vmatprep.mubr.bf16.mxu1 %v578_v18  ;;  %v449_v16 = vld [vmem:[%s5251_s10 + $0x4a0] sm:$0xff]  ;;  %v455_v18 = vld [vmem:[%s5251_s10 + $0x4d0] sm:$0xff] }
 0x15f   : > { %2912 = vmatpush1.bf16.msra.mxu0 %v4591_v17  ;;  %2840 = vmatprep.mubr.bf16.mxu0 %v584_v20  ;;  %v439_v17 = vld [vmem:[%s5251_s10 + $0x450] sm:$0xff]  ;;  %v4617_v20 = vld [vmem:[#allocation5 + $0x684] ss:$8 sps:$4 sm:$0xff]   ;;  %v625_v27 = vpack.c.bf16 %v449_v16, %v433_v15 }
 0x160   : > { %2913 = vmatprep.subr.bf16.mxu0 %v4596_v19  ;;  %3937 = vmatpush1.bf16.msra.mxu1 %v5411_v29  ;;  %v5460_v19 = vld [vmem:[#allocation5 + $0x740] ss:$8 sps:$4 sm:$0xff]   ;;  %v631_v28 = vpack.c.bf16 %v455_v18, %v439_v17  ;;  %v4645_v16 = vld [vmem:[#allocation5 + $0x6d0] ss:$8 sps:$4 sm:$0xff]   ;;  %v5507_v17 = vld [vmem:[#allocation5 + $0x794] ss:$8 sps:$4 sm:$0xff]  }
 0x161   : > { %3922 = vmatprep.subr.bf16.mxu1 %v5418_v35  ;;  %v529_v18 = vld [vmem:[%s5251_s10 + $0x720] sm:$0xff] }
 0x163   : > { %2914 = vmatpush1.bf16.msra.mxu0 %v4594_v21  ;;  %v466_v21 = vld [vmem:[%s5251_s10 + $0x528] sm:$0xff] }
 0x164   : > { %2915 = vmatprep.subr.bf16.mxu0 %v4599_v26  ;;  %3938 = vmatpush1.bf16.msra.mxu1 %v5426_v45  ;;  %v5469_v26 = vld [vmem:[#allocation5 + $0x750] ss:$8 sps:$4 sm:$0xff]   ;;  %v642_v32 = vpack.c.bf16 %v482_v23, %v466_v21 }
 0x165   : > { %2502 = vmatmul.mubr.bf16.gmra.mrb[4].mxu1 %v577_v33  ;;  %3923 = vmatprep.subr.bf16.mxu1 %v5431_v50  ;;  %v4623_v33 = vld [vmem:[#allocation5 + $0x694] ss:$8 sps:$4 sm:$0xff]   ;;  %v5511_v21 = vld [vmem:[#allocation5 + $0x790] ss:$8 sps:$4 sm:$0xff]  }
 0x166   : > { %2841 = vmatmul.mubr.bf16.gmra.mrb[4].mxu0 %v583_v34  ;;  %2511 = vmatprep.mubr.bf16.mxu1 %v594_v37  ;;  %v648_v34 = vpack.c.bf16 %v488_v25, %v472_v24  ;;  %v465_v37 = vld [vmem:[%s5251_s10 + $0x520] sm:$0xff]  ;;  %v535_v23 = vld [vmem:[%s5251_s10 + $0x750] sm:$0xff] }
 0x167   : > { %2916 = vmatpush1.bf16.msra.mxu0 %v4597_v36  ;;  %2850 = vmatprep.mubr.bf16.mxu0 %v600_v39  ;;  %v4621_v36 = vld [vmem:[#allocation5 + $0x690] ss:$8 sps:$4 sm:$0xff]   ;;  %v5515_v25 = vld [vmem:[#allocation5 + $0x7a4] ss:$8 sps:$4 sm:$0xff]  }
 0x168   : > { %2917 = vmatprep.subr.bf16.mxu0 %v4602_v38  ;;  %3939 = vmatpush1.bf16.msra.mxu1 %v5435_v52  ;;  %v481_v38 = vld [vmem:[%s5251_s10 + $0x5a0] sm:$0xff]  ;;  %v471_v39 = vld [vmem:[%s5251_s10 + $0x550] sm:$0xff] }
 0x169   : > { %3924 = vmatprep.subr.bf16.mxu1 %v5443_v0  ;;  %v641_v51 = vpack.c.bf16 %v481_v38, %v465_v37  ;;  %v551_v24 = vld [vmem:[%s5251_s10 + $0x7d0] sm:$0xff]  ;;  %v4651_v37 = vld [vmem:[#allocation5 + $0x6e0] ss:$8 sps:$4 sm:$0xff]  }
 0x16b   : > { %2918 = vmatpush1.bf16.msra.mxu0 %v4600_v40  ;;  %v5476_v40 = vld [vmem:[#allocation5 + $0x764] ss:$8 sps:$4 sm:$0xff]  }
 0x16c   : > { %2919 = vmatprep.subr.bf16.mxu0 %v4605_v46  ;;  %3940 = vmatpush1.bf16.msra.mxu1 %v5446_v3  ;;  %v5482_v46 = vld [vmem:[#allocation5 + $0x774] ss:$8 sps:$4 sm:$0xff]  }
 0x16d   : > { %2512 = vmatmul.mubr.bf16.gmra.mrb[8].mxu1 %v593_v53  ;;  %3925 = vmatprep.subr.bf16.mxu1 %v5449_v5  ;;  %v647_v53 = vpack.c.bf16 %v487_v41, %v471_v39  ;;  %v4659_v39 = vld [vmem:[#allocation5 + $0x6f4] ss:$8 sps:$4 sm:$0xff]   ;;  %v5524_v41 = vld [vmem:[#allocation5 + $0x7a0] ss:$8 sps:$4 sm:$0xff]  }
 0x16e   : > { %2851 = vmatmul.mubr.bf16.gmra.mrb[8].mxu0 %v599_v54  ;;  %2521 = vmatprep.mubr.bf16.mxu1 %v610_v56  ;;  %v4627_v54 = vld [vmem:[#allocation5 + $0x6a0] ss:$8 sps:$4 sm:$0xff]   ;;  %v4635_v56 = vld [vmem:[#allocation5 + $0x6b4] ss:$8 sps:$4 sm:$0xff]  }
 0x16f   : > { %2920 = vmatpush1.bf16.msra.mxu0 %v4603_v55  ;;  %2860 = vmatprep.mubr.bf16.mxu0 %v616_v58  ;;  %v658_v55 = vpack.c.bf16 %v514_v47, %v498_v44  ;;  %v4633_v58 = vld [vmem:[#allocation5 + $0x6b0] ss:$8 sps:$4 sm:$0xff]  }
 0x170   : > { %2921 = vmatprep.subr.bf16.mxu0 %v4608_v57  ;;  %3941 = vmatpush1.bf16.msra.mxu1 %v5460_v19  ;;  %v664_v57 = vpack.c.bf16 %v520_v49, %v504_v48  ;;  %v4657_v47 = vld [vmem:[#allocation5 + $0x6f0] ss:$8 sps:$4 sm:$0xff]   ;;  %v313_v48 = vld [vmem:[%s5251_s10 + $0x60] sm:$0xff] }
 0x171   : > { %3926 = vmatprep.subr.bf16.mxu1 %v5463_v22  ;;  %v329_v49 = vld [vmem:[%s5251_s10 + $0xe0] sm:$0xff] }
 0x173   : > { %2922 = vmatpush1.bf16.msra.mxu0 %v4606_v59  ;;  %v497_v59 = vld [vmem:[%s5251_s10 + $0x620] sm:$0xff] }
 0x174   : > { %2923 = vmatprep.subr.bf16.mxu0 %v4611_v1  ;;  %3942 = vmatpush1.bf16.msra.mxu1 %v5469_v26  ;;  %v5496_v1 = vld [vmem:[#allocation5 + $0x784] ss:$8 sps:$4 sm:$0xff]  }
 0x175   : > { %2522 = vmatmul.mubr.bf16.gmra.mrb[12].mxu1 %v609_v8  ;;  %3927 = vmatprep.subr.bf16.mxu1 %v5476_v40  ;;  %v552_v8 = vld [vmem:[%s5251_s10 + $0x7d8] sm:$0xff] }
 0x176   : > { %2861 = vmatmul.mubr.bf16.gmra.mrb[12].mxu0 %v615_v9  ;;  %2531 = vmatprep.mubr.bf16.mxu1 %v626_v11  ;;  %v5503_v9 = vld [vmem:[#allocation5 + $0x780] ss:$8 sps:$4 sm:$0xff]   ;;  %v663_v11 = vpack.c.bf16 %v519_v63, %v503_v61  ;;  %v680_v15 = vpack.c.bf16 %v552_v8, %v536_v7 }
 0x177   : > { %2924 = vmatpush1.bf16.msra.mxu0 %v4609_v10  ;;  %2870 = vmatprep.mubr.bf16.mxu0 %v632_v13  ;;  %v657_v10 = vpack.c.bf16 %v513_v60, %v497_v59  ;;  %v674_v13 = vpack.c.bf16 %v546_v6, %v530_v4  ;;  %v5540_v59 = vld [vmem:[#allocation5 + $0x7d4] ss:$8 sps:$4 sm:$0xff]   ;;  %v345_v60 = vld [vmem:[%s5251_s10 + $0x160] sm:$0xff]  ;;  %v378_v63 = vld [vmem:[%s5251_s10 + $0x268] sm:$0xff] }
 0x178   : > { %2925 = vmatprep.subr.bf16.mxu0 %v4614_v12  ;;  %3943 = vmatpush1.bf16.msra.mxu1 %v5479_v42  ;;  %v4639_v12 = vld [vmem:[#allocation5 + $0x6c0] ss:$8 sps:$4 sm:$0xff]   ;;  %v5549_v4 = vld [vmem:[#allocation5 + $0x7d0] ss:$8 sps:$4 sm:$0xff]   ;;  %v5552_v6 = vld [vmem:[#allocation5 + $0x7e4] ss:$8 sps:$4 sm:$0xff]  }
 0x179   : > { %3928 = vmatprep.subr.bf16.mxu1 %v5482_v46  ;;  %v361_v61 = vld [vmem:[%s5251_s10 + $0x1e0] sm:$0xff] }
 0x17a   : > { %v5557_v7 = vld [vmem:[#allocation5 + $0x7e0] ss:$8 sps:$4 sm:$0xff]  }
 0x17b   : > { %2926 = vmatpush1.bf16.msra.mxu0 %v4612_v14  ;;  %v4647_v14 = vld [vmem:[#allocation5 + $0x6d4] ss:$8 sps:$4 sm:$0xff]  }
 0x17c   : > { %2927 = vmatprep.subr.bf16.mxu0 %v4617_v20  ;;  %3944 = vmatpush1.bf16.msra.mxu1 %v5493_v62  ;;  %v545_v20 = vld [vmem:[%s5251_s10 + $0x7a0] sm:$0xff] }
 0x17d   : > { %2532 = vmatmul.mubr.bf16.gmra.mrb[16].mxu1 %v625_v27  ;;  %3929 = vmatprep.subr.bf16.mxu1 %v5496_v1  ;;  %v4653_v27 = vld [vmem:[#allocation5 + $0x6e4] ss:$8 sps:$4 sm:$0xff]  }
 0x17e   : > { %2871 = vmatmul.mubr.bf16.gmra.mrb[16].mxu0 %v631_v28  ;;  %2541 = vmatprep.mubr.bf16.mxu1 %v642_v32  ;;  %v314_v28 = vld [vmem:[%s5251_s10 + $0x68] sm:$0xff]  ;;  %v673_v32 = vpack.c.bf16 %v545_v20, %v529_v18  ;;  %v409_v20 = vld [vmem:[%s5251_s10 + $0x360] sm:$0xff] }
 0x17f   : > { %2928 = vmatpush1.bf16.msra.mxu0 %v4615_v31  ;;  %2880 = vmatprep.mubr.bf16.mxu0 %v648_v34  ;;  %v330_v31 = vld [vmem:[%s5251_s10 + $0xe8] sm:$0xff]  ;;  %v444_v34 = vld [vmem:[%s5251_s10 + $0x478] sm:$0xff] }
 0x180   : > { %2929 = vmatprep.subr.bf16.mxu0 %v4623_v33  ;;  %3945 = vmatpush1.bf16.msra.mxu1 %v5503_v9  ;;  %v679_v33 = vpack.c.bf16 %v551_v24, %v535_v23  ;;  %v570_v38 = vpack.c.bf16 %v330_v31, %v314_v28  ;;  %v425_v23 = vld [vmem:[%s5251_s10 + $0x3e0] sm:$0xff]  ;;  %v458_v24 = vld [vmem:[%s5251_s10 + $0x4e8] sm:$0xff]  ;;  %v508_v31 = vld [vmem:[%s5251_s10 + $0x678] sm:$0xff] }
 0x181   : > { %3930 = vmatprep.subr.bf16.mxu1 %v5507_v17  ;;  %v617_v28 = vpack.c.bf16 %v425_v23, %v409_v20  ;;  %v427_v20 = vld [vmem:[%s5251_s10 + $0x3f0] sm:$0xff] }
 0x183   : > { %2930 = vmatpush1.bf16.msra.mxu0 %v4621_v36  ;;  %v460_v36 = vld [vmem:[%s5251_s10 + $0x4f8] sm:$0xff] }
 0x184   : > { %2931 = vmatprep.subr.bf16.mxu0 %v4629_v43  ;;  %3946 = vmatpush1.bf16.msra.mxu1 %v5511_v21  ;;  %v5526_v43 = vld [vmem:[#allocation5 + $0x7b4] ss:$8 sps:$4 sm:$0xff]   ;;  %v636_v44 = vpack.c.bf16 %v460_v36, %v444_v34  ;;  %v441_v34 = vld [vmem:[%s5251_s10 + $0x460] sm:$0xff] }
 0x185   : > { %2542 = vmatmul.mubr.bf16.gmra.mrb[20].mxu1 %v641_v51  ;;  %3931 = vmatprep.subr.bf16.mxu1 %v5515_v25  ;;  %v346_v51 = vld [vmem:[%s5251_s10 + $0x168] sm:$0xff]  ;;  %v457_v36 = vld [vmem:[%s5251_s10 + $0x4e0] sm:$0xff] }
 0x186   : > { %2881 = vmatmul.mubr.bf16.gmra.mrb[20].mxu0 %v647_v53  ;;  %2551 = vmatprep.mubr.bf16.mxu1 %v658_v55  ;;  %v362_v53 = vld [vmem:[%s5251_s10 + $0x1e8] sm:$0xff] }
 0x187   : > { %2932 = vmatpush1.bf16.msra.mxu0 %v4627_v54  ;;  %2890 = vmatprep.mubr.bf16.mxu0 %v664_v57  ;;  %v5533_v54 = vld [vmem:[#allocation5 + $0x7b0] ss:$8 sps:$4 sm:$0xff]   ;;  %v5536_v55 = vld [vmem:[#allocation5 + $0x7c4] ss:$8 sps:$4 sm:$0xff]   ;;  %v5538_v57 = vld [vmem:[#allocation5 + $0x7c0] ss:$8 sps:$4 sm:$0xff]  }
 0x188   : > { %2933 = vmatprep.subr.bf16.mxu0 %v4635_v56  ;;  %3947 = vmatpush1.bf16.msra.mxu1 %v5524_v41  ;;  %v569_v56 = vpack.c.bf16 %v329_v49, %v313_v48  ;;  %v473_v49 = vld [vmem:[%s5251_s10 + $0x560] sm:$0xff] }
 0x189   : > { %3932 = vmatprep.subr.bf16.mxu1 %v5526_v43 }
 0x18b   : > { %2934 = vmatpush1.bf16.msra.mxu0 %v4633_v58  ;;  %v586_v58 = vpack.c.bf16 %v362_v53, %v346_v51  ;;  %v489_v51 = vld [vmem:[%s5251_s10 + $0x5e0] sm:$0xff]  ;;  %v506_v53 = vld [vmem:[%s5251_s10 + $0x668] sm:$0xff] }
 0x18c   : > { %2935 = vmatprep.subr.bf16.mxu0 %v4641_v2  ;;  %3948 = vmatpush1.bf16.msra.mxu1 %v5533_v54  ;;  %v394_v2 = vld [vmem:[%s5251_s10 + $0x2e8] sm:$0xff] }
 0x18d   : > { %2552 = vmatmul.mubr.bf16.gmra.mrb[24].mxu1 %v657_v10  ;;  %3933 = vmatprep.subr.bf16.mxu1 %v5536_v55  ;;  %v602_v8 = vpack.c.bf16 %v394_v2, %v378_v63  ;;  %v393_v10 = vld [vmem:[%s5251_s10 + $0x2e0] sm:$0xff]  ;;  %v538_v63 = vld [vmem:[%s5251_s10 + $0x768] sm:$0xff] }
 0x18e   : > { %2891 = vmatmul.mubr.bf16.gmra.mrb[24].mxu0 %v663_v11  ;;  %2561 = vmatprep.mubr.bf16.mxu1 %v674_v13  ;;  %v426_v11 = vld [vmem:[%s5251_s10 + $0x3e8] sm:$0xff]  ;;  %v459_v13 = vld [vmem:[%s5251_s10 + $0x4f0] sm:$0xff] }
 0x18f   : > { %2936 = vmatpush1.bf16.msra.mxu0 %v4639_v12  ;;  %2900 = vmatprep.mubr.bf16.mxu0 %v680_v15  ;;  %v5572_v12 = vld [vmem:[#allocation5 + $0x7f0] ss:$8 sps:$4 sm:$0xff]   ;;  %v554_v2 = vld [vmem:[%s5251_s10 + $0x7e8] sm:$0xff] }
 0x190   : > { %2937 = vmatprep.subr.bf16.mxu0 %v4647_v14  ;;  %3949 = vmatpush1.bf16.msra.mxu1 %v5538_v57  ;;  %v492_v15 = vld [vmem:[%s5251_s10 + $0x5f8] sm:$0xff] }
 0x191   : > { %3934 = vmatprep.subr.bf16.mxu1 %v5540_v59 }
 0x193   : > { %2938 = vmatpush1.bf16.msra.mxu0 %v4645_v16 }
 0x194   : > { %2939 = vmatprep.subr.bf16.mxu0 %v4653_v27  ;;  %3950 = vmatpush1.bf16.msra.mxu1 %v5549_v4  ;;  %v491_v27 = vld [vmem:[%s5251_s10 + $0x5f0] sm:$0xff] }
 0x195   : > { %2562 = vmatmul.mubr.bf16.gmra.mrb[28].mxu1 %v673_v32  ;;  %3935 = vmatprep.subr.bf16.mxu1 %v5552_v6  ;;  %v524_v32 = vld [vmem:[%s5251_s10 + $0x6f8] sm:$0xff] }
 0x196   : > { %2901 = vmatmul.mubr.bf16.gmra.mrb[28].mxu0 %v679_v33  ;;  %3096 = vmatprep.mubr.bf16.mxu1 %v636_v44  ;;  %v668_v33 = vpack.c.bf16 %v524_v32, %v508_v31  ;;  %v540_v44 = vld [vmem:[%s5251_s10 + $0x778] sm:$0xff] }
 0x197   : > { %2940 = vmatpush1.bf16.msra.mxu0 %v4651_v37  ;;  %2943 = vmatprep.mubr.bf16.mxu0 %v570_v38  ;;  %v474_v37 = vld [vmem:[%s5251_s10 + $0x568] sm:$0xff]  ;;  %v4692_v31 = vld [vmem:[#allocation8 + $0x10] sm:$0xff]   ;;  %v4693_v32 = vld [vmem:[#allocation8 + $0x58] sm:$0xff]  }
 0x198   : > { %2941 = vmatprep.subr.bf16.mxu0 %v4659_v39  ;;  %3951 = vmatpush1.bf16.msra.mxu1 %v5557_v7  ;;  %v490_v38 = vld [vmem:[%s5251_s10 + $0x5e8] sm:$0xff]  ;;  %v633_v39 = vpack.c.bf16 %v457_v36, %v441_v34 }
 0x199   : > { %v4695_v36 = vld [vmem:[#allocation8 + $0x60] sm:$0xff]  }
 0x19b   : > { %2942 = vmatpush1.bf16.msra.mxu0 %v4657_v47  ;;  %v556_v47 = vld [vmem:[%s5251_s10 + $0x7f8] sm:$0xff] }
 0x19c   : > { %3024 = vmatprep.subr.bf16.mxu0 %v5413_v30  ;;  %v585_v30 = vpack.c.bf16 %v361_v61, %v345_v60  ;;  %v684_v48 = vpack.c.bf16 %v556_v47, %v540_v44  ;;  %v521_v61 = vld [vmem:[%s5251_s10 + $0x6e0] sm:$0xff] }
 0x19e   : > { %2944 = vmatmul.mubr.bf16.vlgmr.msra.gmra.mrb[0].mxu0 %v569_v56  ;;  %v522_v56 = vld [vmem:[%s5251_s10 + $0x6e8] sm:$0xff] }
 0x19f   : > { %3025 = vmatpush1.bf16.msra.mxu0 %v5411_v29  ;;  %2953 = vmatprep.mubr.bf16.mxu0 %v586_v58  ;;  %v5560_v29 = vld [vmem:[#allocation5 + $0x7f4] ss:$8 sps:$4 sm:$0xff]   ;;  %v649_v58 = vpack.c.bf16 %v489_v51, %v473_v49  ;;  %v666_v60 = vpack.c.bf16 %v522_v56, %v506_v53 }
 0x1a0   : > { %3026 = vmatprep.subr.bf16.mxu0 %v5418_v35  ;;  %v377_v35 = vld [vmem:[%s5251_s10 + $0x260] sm:$0xff]  ;;  %3936 = vmatprep.subr.bf16.mxu1 %v5560_v29 }
 0x1a1   : > { %v601_v14 = vpack.c.bf16 %v393_v10, %v377_v35  ;;  %3952 = vmatpush1.bf16.msra.mxu1 %v5572_v12  ;;  %v364_v10 = vld [vmem:[%s5251_s10 + $0x1f8] sm:$0xff] }
 0x1a2   : > { %v4701_v49 = vld [vmem:[#allocation8 + $0x78] sm:$0xff]  }
 0x1a3   : > { %3027 = vmatpush1.bf16.msra.mxu0 %v5426_v45  ;;  %v410_v45 = vld [vmem:[%s5251_s10 + $0x368] sm:$0xff]  ;;  %v4702_v51 = vld [vmem:[#allocation8 + $0x38] sm:$0xff]  }
 0x1a4   : > { %3028 = vmatprep.subr.bf16.mxu0 %v5431_v50  ;;  %v443_v50 = vld [vmem:[%s5251_s10 + $0x470] sm:$0xff] }
 0x1a5   : > { %v635_v16 = vpack.c.bf16 %v459_v13, %v443_v50  ;;  %v396_v50 = vld [vmem:[%s5251_s10 + $0x2f8] sm:$0xff] }
 0x1a6   : > { %2954 = vmatmul.mubr.bf16.gmra.mrb[4].mxu0 %v585_v30  ;;  %v553_v30 = vld [vmem:[%s5251_s10 + $0x7e0] sm:$0xff] }
 0x1a7   : > { %3029 = vmatpush1.bf16.msra.mxu0 %v5435_v52  ;;  %2963 = vmatprep.mubr.bf16.mxu0 %v602_v8  ;;  %v476_v52 = vld [vmem:[%s5251_s10 + $0x578] sm:$0xff] }
 0x1a8   : > { %3030 = vmatprep.subr.bf16.mxu0 %v5443_v0  ;;  %v618_v0 = vpack.c.bf16 %v426_v11, %v410_v45  ;;  %v652_v18 = vpack.c.bf16 %v492_v15, %v476_v52  ;;  %3097 = vmatmul.mubr.bf16.vlgmr.msra.gmra.mrb[32].mxu1 %v635_v16  ;;  %v332_v8 = vld [vmem:[%s5251_s10 + $0xf8] sm:$0xff]  ;;  %v347_v45 = vld [vmem:[%s5251_s10 + $0x170] sm:$0xff] }
 0x1a9   : > { %v380_v11 = vld [vmem:[%s5251_s10 + $0x278] sm:$0xff]  ;;  %v395_v52 = vld [vmem:[%s5251_s10 + $0x2f0] sm:$0xff] }
 0x1aa   : > { %3106 = vmatprep.mubr.bf16.mxu1 %v652_v18  ;;  %v412_v15 = vld [vmem:[%s5251_s10 + $0x378] sm:$0xff] }
 0x1ab   : > { %3031 = vmatpush1.bf16.msra.mxu0 %v5446_v3  ;;  %v442_v3 = vld [vmem:[%s5251_s10 + $0x468] sm:$0xff] }
 0x1ac   : > { %3032 = vmatprep.subr.bf16.mxu0 %v5449_v5  ;;  %v475_v5 = vld [vmem:[%s5251_s10 + $0x570] sm:$0xff] }
 0x1ae   : > { %2964 = vmatmul.mubr.bf16.gmra.mrb[8].mxu0 %v601_v14  ;;  %v379_v14 = vld [vmem:[%s5251_s10 + $0x270] sm:$0xff] }
 0x1af   : > { %3033 = vmatpush1.bf16.msra.mxu0 %v5460_v19  ;;  %2973 = vmatprep.mubr.bf16.mxu0 %v618_v0  ;;  %v634_v19 = vpack.c.bf16 %v458_v24, %v442_v3  ;;  %v428_v0 = vld [vmem:[%s5251_s10 + $0x3f8] sm:$0xff]  ;;  %v603_v16 = vpack.c.bf16 %v395_v52, %v379_v14  ;;  %v4687_v3 = vld [vmem:[#allocation8 + $0x40] sm:$0xff]   ;;  %v941_v14 = vld [vmem:[#allocation7] sm:$0x3] }
 0x1b0   : > { %3034 = vmatprep.subr.bf16.mxu0 %v5463_v22  ;;  %v651_v22 = vpack.c.bf16 %v491_v27, %v475_v5  ;;  %v620_v18 = vpack.c.bf16 %v428_v0, %v412_v15  ;;  %v4688_v24 = vld [vmem:[#allocation8] sm:$0xff]   ;;  %3857 = vmatprep.subr.bf16.mxu1 %v4687_v3  ;;  %v4689_v5 = vld [vmem:[#allocation8 + $0x48] sm:$0xff]  }
 0x1b1   : > { %3858 = vmatpush3.bf16.msra.mxu1 %v4688_v24  ;;  %v4690_v27 = vld [vmem:[#allocation8 + $0x8] sm:$0xff]  }
 0x1b2   : > { %3107 = vmatmul.mubr.bf16.gmra.mrb[36].mxu1 %v651_v22  ;;  %3859 = vmatprep.subr.bf16.mxu1 %v4689_v5 }
 0x1b3   : > { %3035 = vmatpush1.bf16.msra.mxu0 %v5469_v26  ;;  %3116 = vmatprep.mubr.bf16.mxu1 %v668_v33  ;;  %v507_v26 = vld [vmem:[%s5251_s10 + $0x670] sm:$0xff] }
 0x1b4   : > { %3036 = vmatprep.subr.bf16.mxu0 %v5476_v40  ;;  %v523_v40 = vld [vmem:[%s5251_s10 + $0x6f0] sm:$0xff] }
 0x1b5   : > { %3860 = vmatpush3.bf16.msra.mxu1 %v4690_v27 }
 0x1b6   : > { %2974 = vmatmul.mubr.bf16.gmra.mrb[12].mxu0 %v617_v28  ;;  %v4691_v28 = vld [vmem:[#allocation8 + $0x50] sm:$0xff]  }
 0x1b7   : > { %3037 = vmatpush1.bf16.msra.mxu0 %v5479_v42  ;;  %2983 = vmatprep.mubr.bf16.mxu0 %v634_v19  ;;  %v650_v42 = vpack.c.bf16 %v490_v38, %v474_v37  ;;  %v4694_v19 = vld [vmem:[#allocation8 + $0x18] sm:$0xff]   ;;  %v4696_v38 = vld [vmem:[#allocation8 + $0x20] sm:$0xff]  }
 0x1b8   : > { %3038 = vmatprep.subr.bf16.mxu0 %v5482_v46  ;;  %v667_v46 = vpack.c.bf16 %v523_v40, %v507_v26  ;;  %3861 = vmatprep.subr.bf16.mxu1 %v4691_v28  ;;  %v4697_v26 = vld [vmem:[#allocation8 + $0x68] sm:$0xff]  }
 0x1b9   : > { %3862 = vmatpush3.bf16.msra.mxu1 %v4692_v31  ;;  %v4698_v40 = vld [vmem:[#allocation8 + $0x28] sm:$0xff]  }
 0x1ba   : > { %3117 = vmatmul.mubr.bf16.gmra.mrb[40].mxu1 %v667_v46  ;;  %3863 = vmatprep.subr.bf16.mxu1 %v4693_v32 }
 0x1bb   : > { %3039 = vmatpush1.bf16.msra.mxu0 %v5493_v62  ;;  %3126 = vmatprep.mubr.bf16.mxu1 %v684_v48  ;;  %v539_v62 = vld [vmem:[%s5251_s10 + $0x770] sm:$0xff] }
 0x1bc   : > { %3040 = vmatprep.subr.bf16.mxu0 %v5496_v1  ;;  %v555_v1 = vld [vmem:[%s5251_s10 + $0x7f0] sm:$0xff] }
 0x1bd   : > { %3864 = vmatpush3.bf16.msra.mxu1 %v4694_v19  ;;  %v4700_v48 = vld [vmem:[#allocation8 + $0x30] sm:$0xff]  }
 0x1be   : > { %2984 = vmatmul.mubr.bf16.gmra.mrb[16].mxu0 %v633_v39  ;;  %3865 = vmatprep.subr.bf16.mxu1 %v4695_v36 }
 0x1bf   : > { %3041 = vmatpush1.bf16.msra.mxu0 %v5503_v9  ;;  %2993 = vmatprep.mubr.bf16.mxu0 %v650_v42  ;;  %v683_v9 = vpack.c.bf16 %v555_v1, %v539_v62  ;;  %v4699_v42 = vld [vmem:[#allocation8 + $0x70] sm:$0xff]  }
 0x1c0   : > { %3042 = vmatprep.subr.bf16.mxu0 %v5507_v17  ;;  %v505_v17 = vld [vmem:[%s5251_s10 + $0x660] sm:$0xff] }
 0x1c1   : > { %3866 = vmatpush3.bf16.msra.mxu1 %v4696_v38 }
 0x1c2   : > { %3127 = vmatmul.mubr.bf16.gmra.mrb[44].mxu1 %v683_v9  ;;  %3867 = vmatprep.subr.bf16.mxu1 %v4697_v26 }
 0x1c3   : > { %3043 = vmatpush1.bf16.msra.mxu0 %v5511_v21  ;;  %v665_v21 = vpack.c.bf16 %v521_v61, %v505_v17 }
 0x1c4   : > { %3044 = vmatprep.subr.bf16.mxu0 %v5515_v25  ;;  %v682_v25 = vpack.c.bf16 %v554_v2, %v538_v63 }
 0x1c5   : > { %3868 = vmatpush3.bf16.msra.mxu1 %v4698_v40 }
 0x1c6   : > { %2994 = vmatmul.mubr.bf16.gmra.mrb[20].mxu0 %v649_v58  ;;  %3869 = vmatprep.subr.bf16.mxu1 %v4699_v42 }
 0x1c7   : > { %3045 = vmatpush1.bf16.msra.mxu0 %v5524_v41  ;;  %3003 = vmatprep.mubr.bf16.mxu0 %v666_v60  ;;  %v537_v41 = vld [vmem:[%s5251_s10 + $0x760] sm:$0xff] }
 0x1c8   : > { %3046 = vmatprep.subr.bf16.mxu0 %v5526_v43  ;;  %v316_v43 = vld [vmem:[%s5251_s10 + $0x78] sm:$0xff]  ;;  %v681_v35 = vpack.c.bf16 %v553_v30, %v537_v41 }
 0x1c9   : > { %3870 = vmatpush3.bf16.msra.mxu1 %v4700_v48 }
 0x1ca   : > { %3871 = vmatprep.subr.bf16.mxu1 %v4701_v49 }
 0x1cb   : > { %3047 = vmatpush1.bf16.msra.mxu0 %v5533_v54  ;;  %v572_v54 = vpack.c.bf16 %v332_v8, %v316_v43 }
 0x1cc   : > { %3048 = vmatprep.subr.bf16.mxu0 %v5536_v55  ;;  %v315_v55 = vld [vmem:[%s5251_s10 + $0x70] sm:$0xff] }
 0x1cd   : > { %3872 = vmatpush3.bf16.msra.mxu1 %v4702_v51 }
 0x1ce   : > { %3004 = vmatmul.mubr.bf16.gmra.mrb[24].mxu0 %v665_v21 }
 0x1cf   : > { %3049 = vmatpush1.bf16.msra.mxu0 %v5538_v57  ;;  %3013 = vmatprep.mubr.bf16.mxu0 %v682_v25  ;;  %v331_v57 = vld [vmem:[%s5251_s10 + $0xf0] sm:$0xff] }
 0x1d0   : > { %3050 = vmatprep.subr.bf16.mxu0 %v5540_v59  ;;  %v348_v59 = vld [vmem:[%s5251_s10 + $0x178] sm:$0xff] }
 0x1d3   : > { %3051 = vmatpush1.bf16.msra.mxu0 %v5549_v4  ;;  %v571_v4 = vpack.c.bf16 %v331_v57, %v315_v55 }
 0x1d4   : > { %3052 = vmatprep.subr.bf16.mxu0 %v5552_v6  ;;  %v588_v6 = vpack.c.bf16 %v364_v10, %v348_v59 }
 0x1d6   : > { %3014 = vmatmul.mubr.bf16.gmra.mrb[28].mxu0 %v681_v35 }
 0x1d7   : > { %3053 = vmatpush1.bf16.msra.mxu0 %v5557_v7  ;;  %3056 = vmatprep.mubr.bf16.mxu0 %v572_v54  ;;  %v363_v7 = vld [vmem:[%s5251_s10 + $0x1f0] sm:$0xff] }
 0x1d8   : > { %3054 = vmatprep.subr.bf16.mxu0 %v5560_v29  ;;  %v587_v13 = vpack.c.bf16 %v363_v7, %v347_v45  ;;  %v604_v29 = vpack.c.bf16 %v396_v50, %v380_v11 }
 0x1db   : > { %3055 = vmatpush1.bf16.msra.mxu0 %v5572_v12  ;;  %v411_v12 = vld [vmem:[%s5251_s10 + $0x370] sm:$0xff] }
 0x1dc   : > { %v619_v23 = vpack.c.bf16 %v427_v20, %v411_v12 }
 0x1de   : > { %3057 = vmatmul.mubr.bf16.vlgmr.msra.gmra.mrb[0].mxu0 %v571_v4 }
 0x1df   : > { %3066 = vmatprep.mubr.bf16.mxu0 %v588_v6  ;;  %v943_v6 = vlaneseq }
 0x1e1   : > { %v944_v50 = vshrl.u32 %v943_v6, 7 }
 0x1e3   : > { %v949_v52 = vsub.s32 1, %v944_v50 }
 0x1e5   : > { %v5699_v20 = vrot.slane %v941_v14, %v949_v52 }
 0x1e6   : > { %3067 = vmatmul.mubr.bf16.gmra.mrb[4].mxu0 %v587_v13 }
 0x1e7   : > { %3076 = vmatprep.mubr.bf16.mxu0 %v604_v29  ;;  %v945_v29 = vsub.s32 0, %v944_v50 }
 0x1ee   : > { %3077 = vmatmul.mubr.bf16.gmra.mrb[8].mxu0 %v603_v16 }
 0x1ef   : > { %3086 = vmatprep.mubr.bf16.mxu0 %v620_v18  ;;  %v5697_v18 = vrot.slane %v941_v14, %v945_v29 }
 0x1f6   : > { %3087 = vmatmul.mubr.bf16.gmra.mrb[12].mxu0 %v619_v23 }
 0x230   : > { %v5649_v22 = vpop.f32.mrb[0].mxu1 }
 0x231   : > { %v5651_v33 = vpop.f32.mrb[1].mxu1 }
 0x232   : > { %v5653_v34 = vpop.f32.mrb[2].mxu1 }
 0x233   : > { %v5655_v37 = vpop.f32.mrb[3].mxu1 }
 0x238   : > { %v5657_v39 = vpop.f32.mrb[4].mxu1 }
 0x239   : > { %v5659_v44 = vpop.f32.mrb[5].mxu1 }
 0x23a   : > { %v5661_v47 = vpop.f32.mrb[6].mxu1 }
 0x23b   : > { %v5663_v46 = vpop.f32.mrb[7].mxu1 }
 0x240   : > { %v5665_v53 = vpop.f32.mrb[8].mxu1 }
 0x241   : > { %v5667_v56 = vpop.f32.mrb[9].mxu1 }
 0x242   : > { %v5669_v62 = vpop.f32.mrb[10].mxu1 }
 0x243   : > { %v5671_v1 = vpop.f32.mrb[11].mxu1 }
 0x248   : > { %v5673_v58 = vpop.f32.mrb[12].mxu1 }
 0x249   : > { %v5675_v60 = vpop.f32.mrb[13].mxu1 }
 0x24a   : > { %v5677_v9 = vpop.f32.mrb[14].mxu1 }
 0x24b   : > { %v5679_v17 = vpop.f32.mrb[15].mxu1 }
 0x250   : > { %v2533_v61 = vpop.f32.mrb[16].mxu1 }
 0x251   : > { %v2535_v63 = vpop.f32.mrb[17].mxu1  ;;  %v3985_v23 = vadd.f32 %v2533_v61, %v5697_v18 }
 0x252   : > { %v2537_v2 = vpop.f32.mrb[18].mxu1  ;;  %v3988_v3 = vadd.f32 %v2535_v63, %v5699_v20 }
 0x253   : > { %v2539_v21 = vpop.f32.mrb[19].mxu1  ;;  %v3991_v5 = vadd.f32 %v2537_v2, %v5697_v18 }
 0x254   : > { %v3994_v31 = vadd.f32 %v2539_v21, %v5699_v20 }
 0x258   : > { %v2543_v25 = vpop.f32.mrb[20].mxu1 }
 0x259   : > { %v2545_v41 = vpop.f32.mrb[21].mxu1  ;;  %v3997_v2 = vadd.f32 %v2543_v25, %v5697_v18 }
 0x25a   : > { %v2547_v30 = vpop.f32.mrb[22].mxu1  ;;  %v4000_v21 = vadd.f32 %v2545_v41, %v5699_v20 }
 0x25b   : > { %v2549_v43 = vpop.f32.mrb[23].mxu1  ;;  %v4003_v29 = vadd.f32 %v2547_v30, %v5697_v18 }
 0x25c   : > { %v4006_v52 = vadd.f32 %v2549_v43, %v5699_v20 }
 0x260   : > { %v5681_v8 = vpop.f32.mrb[24].mxu1 }
 0x261   : > { %v5683_v35 = vpop.f32.mrb[25].mxu1  ;;  %v4009_v43 = vadd.f32 %v5681_v8, %v5697_v18 }
 0x262   : > { %v5685_v54 = vpop.f32.mrb[26].mxu1 }
 0x263   : > { %v5687_v55 = vpop.f32.mrb[27].mxu1 }
 0x264   : > { %v4018_v8 = vadd.f32 %v5687_v55, %v5699_v20 }
 0x268   : > { %v5689_v57 = vpop.f32.mrb[28].mxu1 }
 0x269   : > { %v5691_v59 = vpop.f32.mrb[29].mxu1  ;;  %v4021_v55 = vadd.f32 %v5689_v57, %v5697_v18 }
 0x26a   : > { %v5693_v10 = vpop.f32.mrb[30].mxu1 }
 0x26b   : > { %v5695_v4 = vpop.f32.mrb[31].mxu1 }
 0x26c   : > { %v4030_v57 = vadd.f32 %v5695_v4, %v5699_v20  ;;  %v3953_v4 = vadd.f32 %v5649_v22, %v5697_v18  ;;  %v3959_v22 = vadd.f32 %v5655_v37, %v5699_v20  ;;  %v3961_v37 = vadd.f32 %v5657_v39, %v5697_v18 }
 0x27b   : > { %v3098_v45 = vpop.f32.mrb[32].mxu1 }
 0x27c   : > { %v3100_v7 = vpop.f32.mrb[33].mxu1 }
 0x27d   : > { %v3102_v11 = vpop.f32.mrb[34].mxu1 }
 0x27e   : > { %v3104_v13 = vpop.f32.mrb[35].mxu1 }
 0x285   : > { %v3108_v15 = vpop.f32.mrb[36].mxu1 }
 0x286   : > { %v3110_v0 = vpop.f32.mrb[37].mxu1 }
 0x287   : > { %v3112_v16 = vpop.f32.mrb[38].mxu1 }
 0x288   : > { %v3114_v12 = vpop.f32.mrb[39].mxu1 }
 0x28d   : > { %v3118_v36 = vpop.f32.mrb[40].mxu1 }
 0x28e   : > { %v3120_v42 = vpop.f32.mrb[41].mxu1 }
 0x28f   : > { %v3122_v51 = vpop.f32.mrb[42].mxu1 }
 0x290   : > { %v3124_v63 = vpop.f32.mrb[43].mxu1 }
 0x291   : > { %v2985_v24 = vpop.f32.mrb[16].mxu0 }
 0x292   : > { %v3986_v27 = vadd.f32 %v3985_v23, %v2985_v24  ;;  %v2987_v28 = vpop.f32.mrb[17].mxu0 }
 0x293   : > { %v3989_v32 = vadd.f32 %v3988_v3, %v2987_v28  ;;  %v2989_v19 = vpop.f32.mrb[18].mxu0 }
 0x294   : > { %v3992_v38 = vadd.f32 %v3991_v5, %v2989_v19  ;;  %v3987_v26 = vadd.f32 %v3986_v27, %v3098_v45  ;;  %v2991_v40 = vpop.f32.mrb[19].mxu0 }
 0x295   : > { %v3995_v48 = vadd.f32 %v3994_v31, %v2991_v40  ;;  %v3990_v49 = vadd.f32 %v3989_v32, %v3100_v7  ;;  %v3128_v3 = vpop.f32.mrb[44].mxu1 }
 0x296   : > { %4703 = vtanh.f32 %v3987_v26  ;;  %v3993_v61 = vadd.f32 %v3992_v38, %v3102_v11 }
 0x297   : > { %4705 = vtanh.f32 %v3990_v49  ;;  %v3996_v6 = vadd.f32 %v3995_v48, %v3104_v13  ;;  %v3130_v13 = vpop.f32.mrb[45].mxu1 }
 0x298   : > { %4707 = vtanh.f32 %v3993_v61  ;;  %v3132_v28 = vpop.f32.mrb[46].mxu1 }
 0x299   : > { %4709 = vtanh.f32 %v3996_v6  ;;  %v2995_v50 = vpop.f32.mrb[20].mxu0  ;;  %v3134_v31 = vpop.f32.mrb[47].mxu1 }
 0x29a   : > { %v3998_v45 = vadd.f32 %v3997_v2, %v2995_v50  ;;  %v2997_v14 = vpop.f32.mrb[21].mxu0 }
 0x29b   : > { %v4001_v7 = vadd.f32 %v4000_v21, %v2997_v14  ;;  %v2999_v23 = vpop.f32.mrb[22].mxu0 }
 0x29c   : > { %v4004_v11 = vadd.f32 %v4003_v29, %v2999_v23  ;;  %v3999_v24 = vadd.f32 %v3998_v45, %v3108_v15  ;;  %v3001_v5 = vpop.f32.mrb[23].mxu0  ;;  %v4012_v15 = vadd.f32 %v5683_v35, %v5699_v20 }
 0x29d   : > { %v4007_v27 = vadd.f32 %v4006_v52, %v3001_v5  ;;  %v4002_v25 = vadd.f32 %v4001_v7, %v3110_v0 }
 0x29e   : > { %4711 = vtanh.f32 %v3999_v24  ;;  %v4005_v41 = vadd.f32 %v4004_v11, %v3112_v16  ;;  %v4015_v16 = vadd.f32 %v5685_v54, %v5697_v18 }
 0x29f   : > { %4713 = vtanh.f32 %v4002_v25  ;;  %v4008_v32 = vadd.f32 %v4007_v27, %v3114_v12 }
 0x2a0   : > { %v5709_v30 = vpop.eup %4703  ;;  %4715 = vtanh.f32 %v4005_v41 }
 0x2a1   : > { %v5713_v19 = vpop.eup %4705  ;;  %4717 = vtanh.f32 %v4008_v32  ;;  %v3005_v38 = vpop.f32.mrb[24].mxu0 }
 0x2a2   : > { %v5717_v0 = vpop.eup %4707  ;;  %v4010_v26 = vadd.f32 %v4009_v43, %v3005_v38  ;;  %v3007_v12 = vpop.f32.mrb[25].mxu0 }
 0x2a3   : > { %v5721_v40 = vpop.eup %4709  ;;  %v4013_v48 = vadd.f32 %v4012_v15, %v3007_v12  ;;  %v3009_v49 = vpop.f32.mrb[26].mxu0  ;;  %v3177_v61 = vpack.c.bf16 %v5717_v0, %v5709_v30 }
 0x2a4   : > { %v4016_v35 = vadd.f32 %v4015_v16, %v3009_v49  ;;  %v4011_v6 = vadd.f32 %v4010_v26, %v3118_v36  ;;  %v3011_v2 = vpop.f32.mrb[27].mxu0  ;;  %v3178_v21 = vpack.c.bf16 %v5721_v40, %v5713_v19  ;;  %v4024_v36 = vadd.f32 %v5691_v59, %v5699_v20  ;;  %v5830_v19 = vld [vmem:[#allocation10] ss:$0 sm:$0xff] }
 0x2a5   : > { %v4019_v50 = vadd.f32 %v4018_v8, %v3011_v2  ;;  %v4014_v54 = vadd.f32 %v4013_v48, %v3120_v42  ;;  %v4027_v42 = vadd.f32 %v5693_v10, %v5697_v18 }
 0x2a6   : > { %4719 = vtanh.f32 %v4011_v6  ;;  %v4017_v29 = vadd.f32 %v4016_v35, %v3122_v51 }
 0x2a7   : > { %4721 = vtanh.f32 %v4014_v54  ;;  %v4020_v45 = vadd.f32 %v4019_v50, %v3124_v63 }
 0x2a8   : > { %v5729_v14 = vpop.eup %4711  ;;  %4723 = vtanh.f32 %v4017_v29 }
 0x2a9   : > { %v5733_v52 = vpop.eup %4713  ;;  %4725 = vtanh.f32 %v4020_v45  ;;  %v3015_v7 = vpop.f32.mrb[28].mxu0  ;;  %v3963_v45 = vadd.f32 %v5659_v44, %v5699_v20 }
 0x2aa   : > { %v5737_v23 = vpop.eup %4715  ;;  %v4022_v51 = vadd.f32 %v4021_v55, %v3015_v7  ;;  %v3017_v63 = vpop.f32.mrb[29].mxu0  ;;  %v3965_v7 = vadd.f32 %v5661_v47, %v5697_v18 }
 0x2ab   : > { %v5741_v11 = vpop.eup %4717  ;;  %v4025_v24 = vadd.f32 %v4024_v36, %v3017_v63  ;;  %v3019_v5 = vpop.f32.mrb[30].mxu0  ;;  %v3179_v27 = vpack.c.bf16 %v5737_v23, %v5729_v14 }
 0x2ac   : > { %v4028_v59 = vadd.f32 %v4027_v42, %v3019_v5  ;;  %v4023_v25 = vadd.f32 %v4022_v51, %v3128_v3  ;;  %v3021_v41 = vpop.f32.mrb[31].mxu0  ;;  %v3180_v32 = vpack.c.bf16 %v5741_v11, %v5733_v52  ;;  %v3955_v3 = vadd.f32 %v5651_v33, %v5699_v20 }
 0x2ad   : > { %v4031_v43 = vadd.f32 %v4030_v57, %v3021_v41  ;;  %v4026_v10 = vadd.f32 %v4025_v24, %v3130_v13  ;;  %v3957_v13 = vadd.f32 %v5653_v34, %v5697_v18  ;;  %v3967_v57 = vadd.f32 %v5663_v46, %v5699_v20 }
 0x2ae   : > { %4727 = vtanh.f32 %v4023_v25  ;;  %v4029_v15 = vadd.f32 %v4028_v59, %v3132_v28  ;;  %v3969_v46 = vadd.f32 %v5665_v53, %v5697_v18 }
 0x2af   : > { %4729 = vtanh.f32 %v4026_v10  ;;  %v4032_v38 = vadd.f32 %v4031_v43, %v3134_v31 }
 0x2b0   : > { %v5749_v16 = vpop.eup %4719  ;;  %4731 = vtanh.f32 %v4029_v15 }
 0x2b1   : > { %v5753_v26 = vpop.eup %4721  ;;  %4733 = vtanh.f32 %v4032_v38  ;;  %v3058_v12 = vpop.f32.mrb[0].mxu0  ;;  %v3971_v38 = vadd.f32 %v5667_v56, %v5699_v20 }
 0x2b2   : > { %v5757_v8 = vpop.eup %4723  ;;  %v3954_v28 = vadd.f32 %v3953_v4, %v3058_v12  ;;  %v3060_v31 = vpop.f32.mrb[1].mxu0  ;;  %v3973_v12 = vadd.f32 %v5669_v62, %v5697_v18 }
 0x2b3   : > { %v5761_v48 = vpop.eup %4725  ;;  %v3956_v49 = vadd.f32 %v3955_v3, %v3060_v31  ;;  %v3062_v35 = vpop.f32.mrb[2].mxu0  ;;  %v3181_v6 = vpack.c.bf16 %v5757_v8, %v5749_v16 }
 0x2b4   : > { %4735 = vtanh.f32 %v3954_v28  ;;  %v3958_v33 = vadd.f32 %v3957_v13, %v3062_v35  ;;  %v3064_v2 = vpop.f32.mrb[3].mxu0  ;;  %v3182_v50 = vpack.c.bf16 %v5761_v48, %v5753_v26 }
 0x2b5   : > { %4737 = vtanh.f32 %v3956_v49  ;;  %v3960_v34 = vadd.f32 %v3959_v22, %v3064_v2  ;;  %v3975_v22 = vadd.f32 %v5671_v1, %v5699_v20  ;;  %v3979_v1 = vadd.f32 %v5675_v60, %v5699_v20 }
 0x2b6   : > { %4739 = vtanh.f32 %v3958_v33 }
 0x2b7   : > { %4741 = vtanh.f32 %v3960_v34 }
 0x2b8   : > { %v5769_v54 = vpop.eup %4727 }
 0x2b9   : > { %v5773_v29 = vpop.eup %4729  ;;  %v3068_v55 = vpop.f32.mrb[4].mxu0 }
 0x2ba   : > { %v5777_v36 = vpop.eup %4731  ;;  %v3962_v42 = vadd.f32 %v3961_v37, %v3068_v55  ;;  %v3070_v51 = vpop.f32.mrb[5].mxu0  ;;  %v3977_v37 = vadd.f32 %v5673_v58, %v5697_v18 }
 0x2bb   : > { %v5781_v63 = vpop.eup %4733  ;;  %v3964_v24 = vadd.f32 %v3963_v45, %v3070_v51  ;;  %v3072_v39 = vpop.f32.mrb[6].mxu0  ;;  %v3183_v5 = vpack.c.bf16 %v5777_v36, %v5769_v54 }
 0x2bc   : > { %4743 = vtanh.f32 %v3962_v42  ;;  %v3966_v44 = vadd.f32 %v3965_v7, %v3072_v39  ;;  %v3074_v59 = vpop.f32.mrb[7].mxu0  ;;  %v3184_v25 = vpack.c.bf16 %v5781_v63, %v5773_v29  ;;  %v3981_v42 = vadd.f32 %v5677_v9, %v5697_v18 }
 0x2bd   : > { %4745 = vtanh.f32 %v3964_v24  ;;  %v3968_v47 = vadd.f32 %v3967_v57, %v3074_v59  ;;  %v3983_v39 = vadd.f32 %v5679_v17, %v5699_v20 }
 0x2be   : > { %v4736_v41 = vpop.eup %4735  ;;  %4747 = vtanh.f32 %v3966_v44 }
 0x2bf   : > { %v4738_v43 = vpop.eup %4737  ;;  %4749 = vtanh.f32 %v3968_v47 }
 0x2c0   : > { %v4740_v10 = vpop.eup %4739 }
 0x2c1   : > { %v4742_v15 = vpop.eup %4741  ;;  %v3078_v4 = vpop.f32.mrb[8].mxu0  ;;  %v3169_v3 = vpack.c.bf16 %v4740_v10, %v4736_v41 }
 0x2c2   : > { %v3970_v13 = vadd.f32 %v3969_v46, %v3078_v4  ;;  %v3080_v28 = vpop.f32.mrb[9].mxu0  ;;  %v3170_v31 = vpack.c.bf16 %v4742_v15, %v4738_v43 }
 0x2c3   : > { %v3972_v49 = vadd.f32 %v3971_v38, %v3080_v28  ;;  %v3082_v35 = vpop.f32.mrb[10].mxu0 }
 0x2c4   : > { %4751 = vtanh.f32 %v3970_v13  ;;  %v3974_v33 = vadd.f32 %v3973_v12, %v3082_v35  ;;  %v3084_v53 = vpop.f32.mrb[11].mxu0  ;;  %3352 = vmatprep.mubr.bf16.mxu1 %v3170_v31 }
 0x2c5   : > { %4753 = vtanh.f32 %v3972_v49  ;;  %v3976_v2 = vadd.f32 %v3975_v22, %v3084_v53  ;;  %3353 = vmatmul.mubr.bf16.vlgmr.msra.gmra.mrb[48].mxu1 %v3169_v3 }
 0x2c6   : > { %v4744_v56 = vpop.eup %4743  ;;  %4755 = vtanh.f32 %v3974_v33 }
 0x2c7   : > { %v4746_v34 = vpop.eup %4745  ;;  %4757 = vtanh.f32 %v3976_v2 }
 0x2c8   : > { %v4748_v62 = vpop.eup %4747 }
 0x2c9   : > { %v4750_v45 = vpop.eup %4749  ;;  %v3088_v55 = vpop.f32.mrb[12].mxu0  ;;  %v3171_v7 = vpack.c.bf16 %v4748_v62, %v4744_v56 }
 0x2ca   : > { %v3978_v51 = vadd.f32 %v3977_v37, %v3088_v55  ;;  %v3090_v57 = vpop.f32.mrb[13].mxu0  ;;  %v3172_v24 = vpack.c.bf16 %v4750_v45, %v4746_v34 }
 0x2cb   : > { %v3980_v44 = vadd.f32 %v3979_v1, %v3090_v57  ;;  %v3092_v59 = vpop.f32.mrb[14].mxu0 }
 0x2cc   : > { %4759 = vtanh.f32 %v3978_v51  ;;  %v3982_v47 = vadd.f32 %v3981_v42, %v3092_v59  ;;  %v3094_v58 = vpop.f32.mrb[15].mxu0  ;;  %3360 = vmatprep.mubr.bf16.mxu1 %v3172_v24 }
 0x2cd   : > { %4761 = vtanh.f32 %v3980_v44  ;;  %v3984_v41 = vadd.f32 %v3983_v39, %v3094_v58  ;;  %3361 = vmatmul.mubr.bf16.gmra.mrb[52].mxu1 %v3171_v7 }
 0x2ce   : > { %v4752_v60 = vpop.eup %4751  ;;  %4763 = vtanh.f32 %v3982_v47 }
 0x2cf   : > { %v4754_v43 = vpop.eup %4753  ;;  %4765 = vtanh.f32 %v3984_v41 }
 0x2d0   : > { %v4756_v9 = vpop.eup %4755 }
 0x2d1   : > { %v4758_v18 = vpop.eup %4757  ;;  %v3173_v10 = vpack.c.bf16 %v4756_v9, %v4752_v60 }
 0x2d2   : > { %v3174_v46 = vpack.c.bf16 %v4758_v18, %v4754_v43 }
 0x2d4   : > { %3368 = vmatprep.mubr.bf16.mxu1 %v3174_v46 }
 0x2d5   : > { %3369 = vmatmul.mubr.bf16.gmra.mrb[56].mxu1 %v3173_v10 }
 0x2d6   : > { %v4760_v17 = vpop.eup %4759 }
 0x2d7   : > { %v4762_v20 = vpop.eup %4761 }
 0x2d8   : > { %v4764_v15 = vpop.eup %4763 }
 0x2d9   : > { %v4766_v38 = vpop.eup %4765  ;;  %v3175_v4 = vpack.c.bf16 %v4764_v15, %v4760_v17 }
 0x2da   : > { %v3176_v3 = vpack.c.bf16 %v4766_v38, %v4762_v20 }
 0x2dc   : > { %3376 = vmatprep.mubr.bf16.mxu1 %v3176_v3 }
 0x2dd   : > { %3377 = vmatmul.mubr.bf16.gmra.mrb[60].mxu1 %v3175_v4 }
 0x2de   : > { %3384 = vmatprep.mubr.bf16.mxu1 %v3178_v21 }
 0x2e5   : > { %3385 = vmatmul.mubr.bf16.gmra.mrb[64].mxu1 %v3177_v61 }
 0x2e6   : > { %3392 = vmatprep.mubr.bf16.mxu1 %v3180_v32 }
 0x2ed   : > { %3393 = vmatmul.mubr.bf16.gmra.mrb[68].mxu1 %v3179_v27 }
 0x2ee   : > { %3400 = vmatprep.mubr.bf16.mxu1 %v3182_v50 }
 0x2f5   : > { %3401 = vmatmul.mubr.bf16.gmra.mrb[72].mxu1 %v3181_v6 }
 0x2f6   : > { %3408 = vmatprep.mubr.bf16.mxu1 %v3184_v25 }
 0x2fd   : > { %3409 = vmatmul.mubr.bf16.gmra.mrb[76].mxu1 %v3183_v5 }
 0x398   : > { %v3873_v30 = vpop.f32.mrb[48].mxu1 }
 0x399   : > { %v3874_v0 = vpop.f32.mrb[49].mxu1 }
 0x39a   : > { %v3875_v40 = vadd.f32 %v3874_v0, %v3873_v30  ;;  %v3876_v61 = vpop.f32.mrb[50].mxu1 }
 0x39b   : > { %v3877_v21 = vpop.f32.mrb[51].mxu1 }
 0x39c   : > { %v3355_v14 = vadd.f32 %v3875_v40, %v5830_v19  ;;  %v3878_v52 = vadd.f32 %v3877_v21, %v3876_v61 }
 0x39e   : > { %3417 = vst [vmem:[%s5833_s26] sm:$0xff] %v3355_v14  ;;  %v3358_v23 = vadd.f32 %v3878_v52, %v5830_v19 }
 0x3a0   : > { %3418 = vst [vmem:[%s5833_s26 + $0x8] sm:$0xff] %v3358_v23  ;;  %v3879_v11 = vpop.f32.mrb[52].mxu1 }
 0x3a1   : > { %v3880_v27 = vpop.f32.mrb[53].mxu1 }
 0x3a2   : > { %v3881_v32 = vadd.f32 %v3880_v27, %v3879_v11  ;;  %v3882_v16 = vpop.f32.mrb[54].mxu1 }
 0x3a3   : > { %v3883_v26 = vpop.f32.mrb[55].mxu1 }
 0x3a4   : > { %v3363_v8 = vadd.f32 %v3881_v32, %v5830_v19  ;;  %v3884_v48 = vadd.f32 %v3883_v26, %v3882_v16 }
 0x3a6   : > { %3419 = vst [vmem:[%s5833_s26 + $0x10] sm:$0xff] %v3363_v8  ;;  %v3366_v6 = vadd.f32 %v3884_v48, %v5830_v19 }
 0x3a8   : > { %3420 = vst [vmem:[%s5833_s26 + $0x18] sm:$0xff] %v3366_v6  ;;  %v3885_v50 = vpop.f32.mrb[56].mxu1 }
 0x3a9   : > { %v3886_v54 = vpop.f32.mrb[57].mxu1 }
 0x3aa   : > { %v3887_v29 = vadd.f32 %v3886_v54, %v3885_v50  ;;  %v3888_v36 = vpop.f32.mrb[58].mxu1 }
 0x3ab   : > { %v3889_v63 = vpop.f32.mrb[59].mxu1 }
 0x3ac   : > { %v3371_v5 = vadd.f32 %v3887_v29, %v5830_v19  ;;  %v3890_v25 = vadd.f32 %v3889_v63, %v3888_v36 }
 0x3ae   : > { %3421 = vst [vmem:[%s5833_s26 + $0x20] sm:$0xff] %v3371_v5  ;;  %v3374_v12 = vadd.f32 %v3890_v25, %v5830_v19 }
 0x3b0   : > { %3422 = vst [vmem:[%s5833_s26 + $0x28] sm:$0xff] %v3374_v12  ;;  %v3891_v13 = vpop.f32.mrb[60].mxu1 }
 0x3b1   : > { %v3892_v28 = vpop.f32.mrb[61].mxu1 }
 0x3b2   : > { %v3893_v31 = vadd.f32 %v3892_v28, %v3891_v13  ;;  %v3894_v22 = vpop.f32.mrb[62].mxu1 }
 0x3b3   : > { %v3895_v49 = vpop.f32.mrb[63].mxu1 }
 0x3b4   : > { %v3379_v35 = vadd.f32 %v3893_v31, %v5830_v19  ;;  %v3896_v33 = vadd.f32 %v3895_v49, %v3894_v22 }
 0x3b6   : > { %3423 = vst [vmem:[%s5833_s26 + $0x30] sm:$0xff] %v3379_v35  ;;  %v3382_v53 = vadd.f32 %v3896_v33, %v5830_v19 }
 0x3b8   : > { %3424 = vst [vmem:[%s5833_s26 + $0x38] sm:$0xff] %v3382_v53  ;;  %v3897_v2 = vpop.f32.mrb[64].mxu1 }
 0x3b9   : > { %v3898_v56 = vpop.f32.mrb[65].mxu1 }
 0x3ba   : > { %v3899_v34 = vadd.f32 %v3898_v56, %v3897_v2  ;;  %v3900_v62 = vpop.f32.mrb[66].mxu1 }
 0x3bb   : > { %v3901_v37 = vpop.f32.mrb[67].mxu1 }
 0x3bc   : > { %v3387_v45 = vadd.f32 %v3899_v34, %v5830_v19  ;;  %v3902_v1 = vadd.f32 %v3901_v37, %v3900_v62 }
 0x3be   : > { %3425 = vst [vmem:[%s5833_s26 + $0x40] sm:$0xff] %v3387_v45  ;;  %v3390_v55 = vadd.f32 %v3902_v1, %v5830_v19 }
 0x3c0   : > { %3426 = vst [vmem:[%s5833_s26 + $0x48] sm:$0xff] %v3390_v55  ;;  %v3903_v7 = vpop.f32.mrb[68].mxu1 }
 0x3c1   : > { %v3904_v42 = vpop.f32.mrb[69].mxu1 }
 0x3c2   : > { %v3905_v51 = vadd.f32 %v3904_v42, %v3903_v7  ;;  %v3906_v57 = vpop.f32.mrb[70].mxu1 }
 0x3c3   : > { %v3907_v24 = vpop.f32.mrb[71].mxu1 }
 0x3c4   : > { %v3395_v39 = vadd.f32 %v3905_v51, %v5830_v19  ;;  %v3908_v44 = vadd.f32 %v3907_v24, %v3906_v57 }
 0x3c6   : > { %3427 = vst [vmem:[%s5833_s26 + $0x50] sm:$0xff] %v3395_v39  ;;  %v3398_v59 = vadd.f32 %v3908_v44, %v5830_v19 }
 0x3c8   : > { %3428 = vst [vmem:[%s5833_s26 + $0x58] sm:$0xff] %v3398_v59  ;;  %v3909_v47 = vpop.f32.mrb[72].mxu1 }
 0x3c9   : > { %v3910_v58 = vpop.f32.mrb[73].mxu1 }
 0x3ca   : > { %v3911_v41 = vadd.f32 %v3910_v58, %v3909_v47  ;;  %v3912_v60 = vpop.f32.mrb[74].mxu1 }
 0x3cb   : > { %v3913_v43 = vpop.f32.mrb[75].mxu1 }
 0x3cc   : > { %v3403_v9 = vadd.f32 %v3911_v41, %v5830_v19  ;;  %v3914_v18 = vadd.f32 %v3913_v43, %v3912_v60 }
 0x3ce   : > { %3429 = vst [vmem:[%s5833_s26 + $0x60] sm:$0xff] %v3403_v9  ;;  %v3406_v10 = vadd.f32 %v3914_v18, %v5830_v19 }
 0x3d0   : > { %3430 = vst [vmem:[%s5833_s26 + $0x68] sm:$0xff] %v3406_v10  ;;  %v3915_v46 = vpop.f32.mrb[76].mxu1 }
 0x3d1   : > { %v3916_v17 = vpop.f32.mrb[77].mxu1 }
 0x3d2   : > { %v3917_v20 = vadd.f32 %v3916_v17, %v3915_v46  ;;  %v3918_v15 = vpop.f32.mrb[78].mxu1 }
 0x3d3   : > { %v3919_v38 = vpop.f32.mrb[79].mxu1 }
 0x3d4   : > { %v3411_v4 = vadd.f32 %v3917_v20, %v5830_v19  ;;  %v3920_v3 = vadd.f32 %v3919_v38, %v3918_v15 }
 0x3d6   : > { %3431 = vst [vmem:[%s5833_s26 + $0x70] sm:$0xff] %v3411_v4  ;;  %v3414_v30 = vadd.f32 %v3920_v3, %v5830_v19 }
 0x3d8   : > { %3432 = vst [vmem:[%s5833_s26 + $0x78] sm:$0xff] %v3414_v30 }
 0x3d9   : > { %4922 = shalt.err (!%p4919_p13)
}
 0x3da   : > { %s4923_s14 = scalar_lea.hbm %s5868_s6, 2048  ;;  %s4927_s10 = scalar_lea.hbm %s5922_s5, 4096 }
 0x3db   : > { %p4924_p9 = scmp.ne.s32.totalorder %s5868_s6, %s4923_s14  ;;  %p4928_p6 = scmp.lt.u32.totalorder %s5868_s6, %s5922_s5 }
 0x3dc   : > { %p4929_p10 = scmp.lt.u32.totalorder %s4927_s10, %s4923_s14  ;;  %p4931_p4 = scmp.lt.u32.totalorder %s4923_s14, %s5868_s6 }
 0x3dd   : > { %p4925_p0 = pnand %p4924_p9, %p5197_p8 }
 0x3de   : > { %p4930_p3 = por %p4929_p10, %p4928_p6 }
 0x3df   : > { %p4926_p11 = pneg %p4925_p0 }
 0x3e0   : > { %p4932_p5 = por %p4931_p4, %p4930_p3 }
 0x3e2   : > { %p4933_p7 = pnand %p4932_p5, %p4926_p11 }
 0x3e4   : > { %4936 = shalt.err (!%p4933_p7)
}
 0x3e5   : > { %s4996_s16 = smov 128   ;;  %s4997_s30 = smov 8  }
 0x3e6   : > { %4227 = dma.vmem_to_hbm [thread:$0]  (%p5197_p8), %s5870_s13, 2048, %s5868_s6, %s3434_s22, %s4996_s16, %s4996_s16, %s4997_s30  }
 0x3e7 PF: > { %s3462_s17 = sand.u32 1, %s4971_s18   ;;  %p5940_p12 = scmp.ne.s32.totalorder %s5927_s25, 0 }
 0x3e8   : > { %p5941_p1 = scmp.ge.s32.totalorder %s4983_s21, 2  ;;  %s3463_s7 = scalar_lea.sflag [#allocation4], %s3462_s17 }
 0x3ea   : > { %p4247_p2 = pnand %p5941_p1, %p5940_p12 }
 0x3ec   : > { %4966 = dma.done.wait (!%p4247_p2), %s3463_s7, 2048  }
 0x3ed   : > { %4968 = vsyncadd (!%p4247_p2), %s3463_s7, 4294965248  ;;  %p20_p13 = scmp.ge.s32.totalorder %s5184_s12, 4   ;;  %s5942_s18 = smov %s4975_s19 }
 0x3ee   : > { %s5943_s19 = smov %s4979_s20  ;;  %s5944_s20 = smov %s5193_s23 }
 0x3ef   : > { %s5945_s21 = smov %s5184_s12  ;;  %22 = sbr.rel (!%p20_p13) target bundleno = 7 (0x7), region = 101 }
 0x3f6   :  { %3468 = vsyncpa [#allocation3], 1 }
 0x3f7   :  { %3470 = vsyncpa [#allocation3 + $0x1], 1 }
 0x3f8   :  { %3471 = vsyncpa [#allocation6], 1 }
 0x3f9   :  { %3472 = vsyncpa [#allocation9], 1 }
 0x3fa   :  { %3473 = vsyncpa [#allocation4], 1 }
 0x3fb   :  { %3475 = vsyncpa [#allocation4 + $0x1], 1 }

</bundles_post_ra>
